<compile_context>
chip_gen: v7x
topology: tpu7x:2x2x1
jax: 0.10.0
libtpu: 0.0.40
codegen_flags: <defaults>
</compile_context>

<pallas_src>
import functools

import jax
import jax.numpy as jnp
from jax import lax
from jax.experimental import pallas as pl
from jax.experimental.pallas import tpu as pltpu


# ----------------------------------------------------------------------------
# Pallas kernel: one (batch, time-tile) block per grid step.
# ----------------------------------------------------------------------------
def _wavenet_kernel(
    t_ref,                      # SMEM (B,) f32
    audio_ref, spect_ref,       # VMEM (n_in, ext), (n_mel, ext)
    w_start_ref, b_start_ref,   # (C, n_in), (C, 1)
    w_cond_ref, b_cond_ref,     # (L, 2C, n_mel), (L, 2C, 1)
    w_in_ref, b_in_ref,         # (L, 2C, ks*C), (L, 2C, 1)
    w_time_ref, b_time_ref,     # (L, 2C, 1), (L, 2C, 1)
    w_rs_ref, b_rs_ref,         # (L, 2C, C), (L, 2C, 1)
    w_end_ref, b_end_ref,       # (n_in, C), (n_in, 1)
    out_ref,                    # (n_in, tile_t)
    apad_ref,                   # VMEM scratch (C, ext + 2*maxpad)
    *, n_layers, n_channels, kernel_size, d_i,
    halo, maxpad, seq_len, tile_t, matmul_dtype,
):
    C = n_channels
    ks = kernel_size
    half = (ks - 1) // 2
    ext = tile_t + 2 * halo
    f32 = jnp.float32

    b = pl.program_id(0)
    j = pl.program_id(1)

    def mm(w, x):
        # MXU matmul; operands optionally cast to bf16, accumulation in f32.
        return jnp.dot(w.astype(matmul_dtype), x.astype(matmul_dtype),
                       preferred_element_type=f32)

    # Validity mask over the halo-extended window: 1 on true-sequence
    # positions, 0 on padding.  Reproduces the dilated convs' "same" zero
    # padding and keeps out-of-range residual values from leaking into
    # interior positions through deeper layers.
    pos = lax.broadcasted_iota(jnp.int32, (1, ext), 1)
    lo = halo - j * tile_t
    mask = jnp.logical_and(pos >= lo, pos < lo + seq_len).astype(f32)    # (1, ext)

    tval = t_ref[b]                                    # scalar from SMEM
    audio_in = audio_ref[...].astype(f32)              # (n_in, ext)
    spect_in = spect_ref[...].astype(f32)              # (n_mel, ext)

    # start: 1x1 conv (weight-norm folded into the effective weight)
    a = (mm(w_start_ref[...], audio_in) + b_start_ref[...]) * mask       # (C, ext)
    skip = jnp.zeros((C, ext), f32)

    # Zero the tap staging buffer once; its borders stay zero, only the
    # center is rewritten each layer.
    apad_ref[...] = jnp.zeros_like(apad_ref)

    for i in range(n_layers):
        dil = d_i ** i

        # Dilated conv: stage the residual, take ks static lane-shifted
        # slices, fuse all taps into a single matmul.
        apad_ref[:, maxpad:maxpad + ext] = a
        taps = []
        for k in range(ks):
            s = maxpad + (k - half) * dil
            taps.append(apad_ref[:, s:s + ext])                          # (C, ext)
        stacked = jnp.concatenate(taps, axis=0)                          # (ks*C, ext)
        y = mm(w_in_ref[i], stacked) + b_in_ref[i]                       # (2C, ext)

        # Per-layer conditioning projection (no (2C*L, T) buffer).
        cond = mm(w_cond_ref[i], spect_in) + b_cond_ref[i]               # (2C, ext)
        # time layer: Linear(1, 2C) -> per-channel bias, broadcast over time
        tvec = tval * w_time_ref[i] + b_time_ref[i]                      # (2C, 1)

        # fused_add_tanh_sigmoid_multiply_with_t
        in_act = y + cond + tvec
        t_act = jnp.tanh(in_act[:C, :])
        s_act = 1.0 / (1.0 + jnp.exp(-in_act[C:, :]))   # sigmoid (exp on EUP)
        acts = t_act * s_act                                             # (C, ext)

        if i < n_layers - 1:
            rs = mm(w_rs_ref[i], acts) + b_rs_ref[i]                     # (2C, ext)
            a = (a + rs[:C, :]) * mask
            skip = skip + rs[C:, :]
        else:
            w_last = w_rs_ref[i][:C, :]                                  # (C, C)
            rs = mm(w_last, acts) + b_rs_ref[i][:C, :]                   # (C, ext)
            skip = skip + rs

    # end: 1x1 conv; write only the interior (non-halo) part of the tile.
    out = mm(w_end_ref[...], skip) + b_end_ref[...]                      # (n_in, ext)
    out_ref[...] = out[:, halo:halo + tile_t].astype(out_ref.dtype)


# ----------------------------------------------------------------------------
# Wrapper
# ----------------------------------------------------------------------------
def wavenet_forward(audio, spect, t, params, *, n_layers, n_channels,
                    kernel_size, d_i, tile_t=None,
                    matmul_dtype=jnp.bfloat16):
    """audio: (B, n_in, T) NCL; spect: (B, n_mel, T) NCL; t: (B,) or (B,1)."""
    audio = audio.astype(jnp.float32)
    spect = spect.astype(jnp.float32)
    B, n_in, T = audio.shape
    n_mel = spect.shape[1]
    C = n_channels
    ks = kernel_size
    half = (ks - 1) // 2

    if tile_t is None:
        tile_t = T
    tile_t = min(tile_t, T)
    assert T % tile_t == 0, "T must be divisible by tile_t"
    nt = T // tile_t

    # Full one-sided receptive field of the dilated stack -> exact halo.
    halo = half * sum(d_i ** i for i in range(n_layers))
    maxpad = half * (d_i ** (n_layers - 1))            # largest single-layer reach
    ext = tile_t + 2 * halo

    # Zero-pad time and build overlapping (halo'd) tiles wrapper-side: keeps
    # the kernel-side BlockSpecs plain/blocked and tile boundaries exact.
    ap = jnp.pad(audio, ((0, 0), (0, 0), (halo, halo)))
    sp = jnp.pad(spect, ((0, 0), (0, 0), (halo, halo)))
    audio_tiles = jnp.stack(
        [ap[:, :, j * tile_t:j * tile_t + ext] for j in range(nt)], axis=1)
    spect_tiles = jnp.stack(
        [sp[:, :, j * tile_t:j * tile_t + ext] for j in range(nt)], axis=1)
    t_vec = jnp.reshape(t, (B,)).astype(jnp.float32)

    weights = [params[k] for k in (
        "w_start", "b_start", "w_cond", "b_cond", "w_in", "b_in",
        "w_time", "b_time", "w_rs", "b_rs", "w_end", "b_end")]

    def w_spec(arr):
        nd = arr.ndim
        return pl.BlockSpec(arr.shape, lambda b, j, _nd=nd: (0,) * _nd)

    in_specs = [
        pl.BlockSpec(memory_space=pltpu.MemorySpace.SMEM),                  # t
        pl.BlockSpec((None, None, n_in, ext), lambda b, j: (b, j, 0, 0)),   # audio
        pl.BlockSpec((None, None, n_mel, ext), lambda b, j: (b, j, 0, 0)),  # spect
    ] + [w_spec(w) for w in weights]

    out_specs = pl.BlockSpec((None, None, n_in, tile_t), lambda b, j: (b, j, 0, 0))

    kernel = functools.partial(
        _wavenet_kernel,
        n_layers=n_layers, n_channels=C, kernel_size=ks, d_i=d_i,
        halo=halo, maxpad=maxpad, seq_len=T, tile_t=tile_t,
        matmul_dtype=matmul_dtype)

    out_tiles = pl.pallas_call(
        kernel,
        out_shape=jax.ShapeDtypeStruct((B, nt, n_in, tile_t), jnp.float32),
        grid=(B, nt),
        in_specs=in_specs,
        out_specs=out_specs,
        scratch_shapes=[pltpu.VMEM((C, ext + 2 * maxpad), jnp.float32)],
        compiler_params=pltpu.CompilerParams(
            dimension_semantics=("parallel", "parallel")),
    )(t_vec, audio_tiles, spect_tiles, *weights)

    # (B, nt, n_in, tile_t) -> (B, n_in, T)
    return out_tiles.transpose(0, 2, 1, 3).reshape(B, n_in, T)


# ----------------------------------------------------------------------------
# Pure-JAX reference (same NCL layout / parameter layout), for verification.
# ----------------------------------------------------------------------------
def wavenet_reference(audio, spect, t, params, *, n_layers, n_channels,
                      kernel_size, d_i, matmul_dtype=jnp.float32):
    f32 = jnp.float32

    def mm(w, x):
        return jnp.einsum("oc,bct->bot", w.astype(matmul_dtype),
                          x.astype(matmul_dtype),
                          preferred_element_type=f32)

    audio = audio.astype(f32)
    spect = spect.astype(f32)
    B, n_in, T = audio.shape
    C = n_channels
    ks = kernel_size
    half = (ks - 1) // 2
    t_ = jnp.reshape(t, (B,)).astype(f32)

    a = mm(params["w_start"], audio) + params["b_start"]
    skip = jnp.zeros((B, C, T), f32)
    for i in range(n_layers):
        dil = d_i ** i
        pad = half * dil
        a_pad = jnp.pad(a, ((0, 0), (0, 0), (pad, pad)))
        taps = jnp.concatenate(
            [a_pad[:, :, k * dil:k * dil + T] for k in range(ks)], axis=1)
        y = mm(params["w_in"][i], taps) + params["b_in"][i]
        cond = mm(params["w_cond"][i], spect) + params["b_cond"][i]
        tvec = t_[:, None, None] * params["w_time"][i] + params["b_time"][i]
        in_act = y + cond + tvec
        acts = jnp.tanh(in_act[:, :C]) * (1.0 / (1.0 + jnp.exp(-in_act[:, C:])))
        if i < n_layers - 1:
            rs = mm(params["w_rs"][i], acts) + params["b_rs"][i]
            a = a + rs[:, :C]
            skip = skip + rs[:, C:]
        else:
            rs = mm(params["w_rs"][i][:C], acts) + params["b_rs"][i][:C]
            skip = skip + rs
    return mm(params["w_end"], skip) + params["b_end"]


# ----------------------------------------------------------------------------
# Synthetic parameters (effective weight-norm weights, NCL-friendly layout).
# ----------------------------------------------------------------------------
def init_params(key, *, n_in, n_mel, n_channels, n_layers, kernel_size,
                zero_end=False):
    C = n_channels
    ks = kernel_size
    L = n_layers
    kk = jax.random.split(key, 12)
    s = 0.2

    def rnd(k, shape):
        return s * jax.random.normal(k, shape, jnp.float32)

    params = {
        "w_start": rnd(kk[0], (C, n_in)),
        "b_start": rnd(kk[1], (C, 1)),
        # cond 1x1 conv, stored per-layer: (L, 2C, n_mel)
        "w_cond": rnd(kk[2], (L, 2 * C, n_mel)),
        "b_cond": rnd(kk[3], (L, 2 * C, 1)),
        # dilated conv, taps fused on the K axis: w_in[l][:, k*C + ci] == W[co, ci, k]
        "w_in": rnd(kk[4], (L, 2 * C, ks * C)),
        "b_in": rnd(kk[5], (L, 2 * C, 1)),
        "w_time": rnd(kk[6], (L, 2 * C, 1)),
        "b_time": rnd(kk[7], (L, 2 * C, 1)),
        # res/skip 1x1 conv; last layer only uses the first C output rows
        "w_rs": rnd(kk[8], (L, 2 * C, C)),
        "b_rs": rnd(kk[9], (L, 2 * C, 1)),
        # PyTorch zero-initializes `end`; use random here so the test is
        # meaningful (the forward pass is identical either way).
        "w_end": jnp.zeros((n_in, C), jnp.float32) if zero_end else rnd(kk[10], (n_in, C)),
        "b_end": jnp.zeros((n_in, 1), jnp.float32) if zero_end else rnd(kk[11], (n_in, 1)),
    }
    return params


if __name__ == "__main__":
    # Small config consistent with the module's forward.
    B, T = 2, 16
    n_in_channels = 4
    n_mel_channels = 8
    n_channels = 8           # even, as asserted
    n_layers = 3
    kernel_size = 3          # odd, as asserted
    d_i = 2                  # dilation base
    tile_t = 8               # 2 time tiles; halo = 1 + 2 + 4 = 7

    key = jax.random.PRNGKey(0)
    k_audio, k_spect, k_t, k_param = jax.random.split(key, 4)

    audio = jax.random.normal(k_audio, (B, n_in_channels, T), jnp.float32)   # NCL
    spect = jax.random.normal(k_spect, (B, n_mel_channels, T), jnp.float32)  # NCL
    t = jax.random.normal(k_t, (B, 1), jnp.float32)

    params = init_params(k_param, n_in=n_in_channels, n_mel=n_mel_channels,
                         n_channels=n_channels, n_layers=n_layers,
                         kernel_size=kernel_size, zero_end=False)

    common = dict(n_layers=n_layers, n_channels=n_channels,
                  kernel_size=kernel_size, d_i=d_i)

    # --- main (bf16-matmul) path vs reference with identically-quantized
    #     operands: tight, structure-validating check ---------------------
    out_bf16 = jax.block_until_ready(
        wavenet_forward(audio, spect, t, params, tile_t=tile_t,
                        matmul_dtype=jnp.bfloat16, **common))
    ref_bf16 = jax.block_until_ready(
        wavenet_reference(audio, spect, t, params,
                          matmul_dtype=jnp.bfloat16, **common))
    assert out_bf16.shape == (B, n_in_channels, T), out_bf16.shape
    assert jnp.all(jnp.isfinite(out_bf16))
    assert jnp.allclose(out_bf16, ref_bf16, atol=1e-3, rtol=1e-3), \
        float(jnp.max(jnp.abs(out_bf16 - ref_bf16)))

    # --- f32-matmul path (looser: XLA / Mosaic may use different default
    #     MXU precisions for f32 operands) -------------------------------
    out_f32 = jax.block_until_ready(
        wavenet_forward(audio, spect, t, params, tile_t=tile_t,
                        matmul_dtype=jnp.float32, **common))
    ref_f32 = jax.block_until_ready(
        wavenet_reference(audio, spect, t, params,
                          matmul_dtype=jnp.float32, **common))
    assert jnp.allclose(out_f32, ref_f32, atol=5e-2, rtol=5e-2), \
        float(jnp.max(jnp.abs(out_f32 - ref_f32)))

    # --- tiled vs untiled time axis must agree exactly (halo correctness) -
    out_one = jax.block_until_ready(
        wavenet_forward(audio, spect, t, params, tile_t=T,
                        matmul_dtype=jnp.bfloat16, **common))
    assert jnp.allclose(out_one, out_bf16, atol=1e-3, rtol=1e-3)

    print("KERNEL_OK")
</pallas_src>

<mosaic_0001>
module attributes {stable_mosaic.version = 11 : i64} {
  func.func @_wavenet_kernel(%arg0: i32, %arg1: i32, %arg2: memref<2xf32, #tpu.memory_space<smem>>, %arg3: memref<1x1x4x22xf32, #tpu.memory_space<vmem>>, %arg4: memref<1x1x8x22xf32, #tpu.memory_space<vmem>>, %arg5: memref<8x4xf32, #tpu.memory_space<vmem>>, %arg6: memref<8x1xf32, #tpu.memory_space<vmem>>, %arg7: memref<3x16x8xf32, #tpu.memory_space<vmem>>, %arg8: memref<3x16x1xf32, #tpu.memory_space<vmem>>, %arg9: memref<3x16x24xf32, #tpu.memory_space<vmem>>, %arg10: memref<3x16x1xf32, #tpu.memory_space<vmem>>, %arg11: memref<3x16x1xf32, #tpu.memory_space<vmem>>, %arg12: memref<3x16x1xf32, #tpu.memory_space<vmem>>, %arg13: memref<3x16x8xf32, #tpu.memory_space<vmem>>, %arg14: memref<3x16x1xf32, #tpu.memory_space<vmem>>, %arg15: memref<4x8xf32, #tpu.memory_space<vmem>>, %arg16: memref<4x1xf32, #tpu.memory_space<vmem>>, %arg17: memref<1x1x4x8xf32, #tpu.memory_space<vmem>>, %arg18: memref<8x30xf32, #tpu.memory_space<vmem>>) attributes {dimension_semantics = [#tpu.dimension_semantics<parallel>, #tpu.dimension_semantics<parallel>], iteration_bounds = array<i64: 2, 2>, scalar_prefetch = 0 : i64, scratch_operands = 1 : i64, tpu.core_type = #tpu.core_type<tc>, window_params = [{transform_indices = @transform_0, window_bounds = array<i64: 2>}, {transform_indices = @transform_1, window_bounds = array<i64: 1, 1, 4, 22>}, {transform_indices = @transform_2, window_bounds = array<i64: 1, 1, 8, 22>}, {pipeline_mode = #tpu.pipeline_mode<synchronous>, transform_indices = @transform_3, window_bounds = array<i64: 8, 4>}, {pipeline_mode = #tpu.pipeline_mode<synchronous>, transform_indices = @transform_4, window_bounds = array<i64: 8, 1>}, {pipeline_mode = #tpu.pipeline_mode<synchronous>, transform_indices = @transform_5, window_bounds = array<i64: 3, 16, 8>}, {pipeline_mode = #tpu.pipeline_mode<synchronous>, transform_indices = @transform_6, window_bounds = array<i64: 3, 16, 1>}, {pipeline_mode = #tpu.pipeline_mode<synchronous>, transform_indices = @transform_7, window_bounds = array<i64: 3, 16, 24>}, {pipeline_mode = #tpu.pipeline_mode<synchronous>, transform_indices = @transform_8, window_bounds = array<i64: 3, 16, 1>}, {pipeline_mode = #tpu.pipeline_mode<synchronous>, transform_indices = @transform_9, window_bounds = array<i64: 3, 16, 1>}, {pipeline_mode = #tpu.pipeline_mode<synchronous>, transform_indices = @transform_10, window_bounds = array<i64: 3, 16, 1>}, {pipeline_mode = #tpu.pipeline_mode<synchronous>, transform_indices = @transform_11, window_bounds = array<i64: 3, 16, 8>}, {pipeline_mode = #tpu.pipeline_mode<synchronous>, transform_indices = @transform_12, window_bounds = array<i64: 3, 16, 1>}, {pipeline_mode = #tpu.pipeline_mode<synchronous>, transform_indices = @transform_13, window_bounds = array<i64: 4, 8>}, {pipeline_mode = #tpu.pipeline_mode<synchronous>, transform_indices = @transform_14, window_bounds = array<i64: 4, 1>}, {transform_indices = @transform_15, window_bounds = array<i64: 1, 1, 4, 8>}]} {
    %0 = tpu.iota {dimensions = array<i32: 1>} : vector<1x22xi32>
    %c8_i32 = arith.constant 8 : i32
    %1 = arith.muli %arg1, %c8_i32 : i32
    %c7_i32 = arith.constant 7 : i32
    %2 = arith.subi %c7_i32, %1 : i32
    %3 = vector.broadcast %2 : i32 to vector<1x22xi32>
    %4 = arith.cmpi sge, %0, %3 : vector<1x22xi32>
    %c16_i32 = arith.constant 16 : i32
    %5 = arith.addi %2, %c16_i32 : i32
    %6 = vector.broadcast %5 : i32 to vector<1x22xi32>
    %7 = arith.cmpi slt, %0, %6 : vector<1x22xi32>
    %8 = arith.andi %4, %7 : vector<1x22xi1>
    %9 = arith.extui %8 : vector<1x22xi1> to vector<1x22xi32>
    %10 = arith.sitofp %9 : vector<1x22xi32> to vector<1x22xf32>
    %11 = arith.index_cast %arg0 : i32 to index
    %12 = memref.load %arg2[%11] : memref<2xf32, #tpu.memory_space<smem>>
    %c0 = arith.constant 0 : index
    %c0_0 = arith.constant 0 : index
    %c0_1 = arith.constant 0 : index
    %c0_2 = arith.constant 0 : index
    %13 = vector.load %arg3[%c0, %c0_0, %c0_1, %c0_2] : memref<1x1x4x22xf32, #tpu.memory_space<vmem>>, vector<1x1x4x22xf32>
    %14 = vector.shape_cast %13 : vector<1x1x4x22xf32> to vector<4x22xf32>
    %c0_3 = arith.constant 0 : index
    %c0_4 = arith.constant 0 : index
    %c0_5 = arith.constant 0 : index
    %c0_6 = arith.constant 0 : index
    %15 = vector.load %arg4[%c0_3, %c0_4, %c0_5, %c0_6] : memref<1x1x8x22xf32, #tpu.memory_space<vmem>>, vector<1x1x8x22xf32>
    %16 = vector.shape_cast %15 : vector<1x1x8x22xf32> to vector<8x22xf32>
    %c0_7 = arith.constant 0 : index
    %c0_8 = arith.constant 0 : index
    %17 = vector.load %arg5[%c0_7, %c0_8] : memref<8x4xf32, #tpu.memory_space<vmem>>, vector<8x4xf32>
    %18 = arith.truncf %17 : vector<8x4xf32> to vector<8x4xbf16>
    %19 = arith.truncf %14 : vector<4x22xf32> to vector<4x22xbf16>
    %cst = arith.constant dense<0.000000e+00> : vector<8x22xf32>
    %20 = tpu.matmul %18, %19, %cst {dimension_numbers = #tpu.dot_dimension_numbers<[1], [0], [0], [1], [0, 0, 1, 1], [], []>} : vector<8x4xbf16>, vector<4x22xbf16>, vector<8x22xf32> -> vector<8x22xf32>
    %c0_9 = arith.constant 0 : index
    %c0_10 = arith.constant 0 : index
    %21 = vector.load %arg6[%c0_9, %c0_10] : memref<8x1xf32, #tpu.memory_space<vmem>>, vector<8x1xf32>
    %22 = vector.broadcast %21 : vector<8x1xf32> to vector<8x22xf32>
    %23 = arith.addf %20, %22 : vector<8x22xf32>
    %24 = vector.broadcast %10 : vector<1x22xf32> to vector<8x22xf32>
    %25 = arith.mulf %23, %24 : vector<8x22xf32>
    %cst_11 = arith.constant 0.000000e+00 : f32
    %26 = vector.broadcast %cst_11 : f32 to vector<8x22xf32>
    %cst_12 = arith.constant 0.000000e+00 : f32
    %27 = vector.broadcast %cst_12 : f32 to vector<8x30xf32>
    %c0_13 = arith.constant 0 : index
    %c0_14 = arith.constant 0 : index
    %28 = vector.load %arg18[%c0_13, %c0_14] : memref<8x30xf32, #tpu.memory_space<vmem>>, vector<8x30xf32>
    tpu.vector_store %arg18[%c0_13, %c0_14], %27 {strides = array<i32>} : memref<8x30xf32, #tpu.memory_space<vmem>>, vector<8x30xf32>,
    %c0_15 = arith.constant 0 : index
    %c4 = arith.constant 4 : index
    %29 = vector.load %arg18[%c0_15, %c4] : memref<8x30xf32, #tpu.memory_space<vmem>>, vector<8x22xf32>
    tpu.vector_store %arg18[%c0_15, %c4], %25 {strides = array<i32>} : memref<8x30xf32, #tpu.memory_space<vmem>>, vector<8x22xf32>,
    %c0_16 = arith.constant 0 : index
    %c3 = arith.constant 3 : index
    %30 = vector.load %arg18[%c0_16, %c3] : memref<8x30xf32, #tpu.memory_space<vmem>>, vector<8x22xf32>
    %c0_17 = arith.constant 0 : index
    %c4_18 = arith.constant 4 : index
    %31 = vector.load %arg18[%c0_17, %c4_18] : memref<8x30xf32, #tpu.memory_space<vmem>>, vector<8x22xf32>
    %c0_19 = arith.constant 0 : index
    %c5 = arith.constant 5 : index
    %32 = vector.load %arg18[%c0_19, %c5] : memref<8x30xf32, #tpu.memory_space<vmem>>, vector<8x22xf32>
    %33 = tpu.concatenate %30, %31, %32 in 0 : vector<8x22xf32>, vector<8x22xf32>, vector<8x22xf32> -> vector<24x22xf32>
    %c0_20 = arith.constant 0 : index
    %c0_21 = arith.constant 0 : index
    %c0_22 = arith.constant 0 : index
    %34 = vector.load %arg9[%c0_20, %c0_21, %c0_22] : memref<3x16x24xf32, #tpu.memory_space<vmem>>, vector<1x16x24xf32>
    %35 = vector.shape_cast %34 : vector<1x16x24xf32> to vector<16x24xf32>
    %36 = arith.truncf %35 : vector<16x24xf32> to vector<16x24xbf16>
    %37 = arith.truncf %33 : vector<24x22xf32> to vector<24x22xbf16>
    %cst_23 = arith.constant dense<0.000000e+00> : vector<16x22xf32>
    %38 = tpu.matmul %36, %37, %cst_23 {dimension_numbers = #tpu.dot_dimension_numbers<[1], [0], [0], [1], [0, 0, 1, 1], [], []>} : vector<16x24xbf16>, vector<24x22xbf16>, vector<16x22xf32> -> vector<16x22xf32>
    %c0_24 = arith.constant 0 : index
    %c0_25 = arith.constant 0 : index
    %c0_26 = arith.constant 0 : index
    %39 = vector.load %arg10[%c0_24, %c0_25, %c0_26] : memref<3x16x1xf32, #tpu.memory_space<vmem>>, vector<1x16x1xf32>
    %40 = vector.shape_cast %39 : vector<1x16x1xf32> to vector<16x1xf32>
    %41 = vector.broadcast %40 : vector<16x1xf32> to vector<16x22xf32>
    %42 = arith.addf %38, %41 : vector<16x22xf32>
    %c0_27 = arith.constant 0 : index
    %c0_28 = arith.constant 0 : index
    %c0_29 = arith.constant 0 : index
    %43 = vector.load %arg7[%c0_27, %c0_28, %c0_29] : memref<3x16x8xf32, #tpu.memory_space<vmem>>, vector<1x16x8xf32>
    %44 = vector.shape_cast %43 : vector<1x16x8xf32> to vector<16x8xf32>
    %45 = arith.truncf %44 : vector<16x8xf32> to vector<16x8xbf16>
    %46 = arith.truncf %16 : vector<8x22xf32> to vector<8x22xbf16>
    %cst_30 = arith.constant dense<0.000000e+00> : vector<16x22xf32>
    %47 = tpu.matmul %45, %46, %cst_30 {dimension_numbers = #tpu.dot_dimension_numbers<[1], [0], [0], [1], [0, 0, 1, 1], [], []>} : vector<16x8xbf16>, vector<8x22xbf16>, vector<16x22xf32> -> vector<16x22xf32>
    %c0_31 = arith.constant 0 : index
    %c0_32 = arith.constant 0 : index
    %c0_33 = arith.constant 0 : index
    %48 = vector.load %arg8[%c0_31, %c0_32, %c0_33] : memref<3x16x1xf32, #tpu.memory_space<vmem>>, vector<1x16x1xf32>
    %49 = vector.shape_cast %48 : vector<1x16x1xf32> to vector<16x1xf32>
    %50 = vector.broadcast %49 : vector<16x1xf32> to vector<16x22xf32>
    %51 = arith.addf %47, %50 : vector<16x22xf32>
    %c0_34 = arith.constant 0 : index
    %c0_35 = arith.constant 0 : index
    %c0_36 = arith.constant 0 : index
    %52 = vector.load %arg11[%c0_34, %c0_35, %c0_36] : memref<3x16x1xf32, #tpu.memory_space<vmem>>, vector<1x16x1xf32>
    %53 = vector.shape_cast %52 : vector<1x16x1xf32> to vector<16x1xf32>
    %54 = vector.broadcast %12 : f32 to vector<16x1xf32>
    %55 = arith.mulf %54, %53 : vector<16x1xf32>
    %c0_37 = arith.constant 0 : index
    %c0_38 = arith.constant 0 : index
    %c0_39 = arith.constant 0 : index
    %56 = vector.load %arg12[%c0_37, %c0_38, %c0_39] : memref<3x16x1xf32, #tpu.memory_space<vmem>>, vector<1x16x1xf32>
    %57 = vector.shape_cast %56 : vector<1x16x1xf32> to vector<16x1xf32>
    %58 = arith.addf %55, %57 : vector<16x1xf32>
    %59 = arith.addf %42, %51 : vector<16x22xf32>
    %60 = vector.broadcast %58 : vector<16x1xf32> to vector<16x22xf32>
    %61 = arith.addf %59, %60 : vector<16x22xf32>
    %62 = vector.extract_strided_slice %61 {offsets = [0, 0], sizes = [8, 22], strides = [1, 1]} : vector<16x22xf32> to vector<8x22xf32>
    %63 = math.tanh %62 : vector<8x22xf32>
    %64 = vector.extract_strided_slice %61 {offsets = [8, 0], sizes = [8, 22], strides = [1, 1]} : vector<16x22xf32> to vector<8x22xf32>
    %cst_40 = arith.constant 0.000000e+00 : f32
    %65 = vector.broadcast %cst_40 : f32 to vector<8x22xf32>
    %66 = arith.subf %65, %64 : vector<8x22xf32>
    %67 = math.exp %66 : vector<8x22xf32>
    %cst_41 = arith.constant 1.000000e+00 : f32
    %68 = vector.broadcast %cst_41 : f32 to vector<8x22xf32>
    %69 = arith.addf %68, %67 : vector<8x22xf32>
    %cst_42 = arith.constant 1.000000e+00 : f32
    %70 = vector.broadcast %cst_42 : f32 to vector<8x22xf32>
    %71 = arith.divf %70, %69 : vector<8x22xf32>
    %72 = arith.mulf %63, %71 : vector<8x22xf32>
    %c0_43 = arith.constant 0 : index
    %c0_44 = arith.constant 0 : index
    %c0_45 = arith.constant 0 : index
    %73 = vector.load %arg13[%c0_43, %c0_44, %c0_45] : memref<3x16x8xf32, #tpu.memory_space<vmem>>, vector<1x16x8xf32>
    %74 = vector.shape_cast %73 : vector<1x16x8xf32> to vector<16x8xf32>
    %75 = arith.truncf %74 : vector<16x8xf32> to vector<16x8xbf16>
    %76 = arith.truncf %72 : vector<8x22xf32> to vector<8x22xbf16>
    %cst_46 = arith.constant dense<0.000000e+00> : vector<16x22xf32>
    %77 = tpu.matmul %75, %76, %cst_46 {dimension_numbers = #tpu.dot_dimension_numbers<[1], [0], [0], [1], [0, 0, 1, 1], [], []>} : vector<16x8xbf16>, vector<8x22xbf16>, vector<16x22xf32> -> vector<16x22xf32>
    %c0_47 = arith.constant 0 : index
    %c0_48 = arith.constant 0 : index
    %c0_49 = arith.constant 0 : index
    %78 = vector.load %arg14[%c0_47, %c0_48, %c0_49] : memref<3x16x1xf32, #tpu.memory_space<vmem>>, vector<1x16x1xf32>
    %79 = vector.shape_cast %78 : vector<1x16x1xf32> to vector<16x1xf32>
    %80 = vector.broadcast %79 : vector<16x1xf32> to vector<16x22xf32>
    %81 = arith.addf %77, %80 : vector<16x22xf32>
    %82 = vector.extract_strided_slice %81 {offsets = [0, 0], sizes = [8, 22], strides = [1, 1]} : vector<16x22xf32> to vector<8x22xf32>
    %83 = arith.addf %25, %82 : vector<8x22xf32>
    %84 = vector.broadcast %10 : vector<1x22xf32> to vector<8x22xf32>
    %85 = arith.mulf %83, %84 : vector<8x22xf32>
    %86 = vector.extract_strided_slice %81 {offsets = [8, 0], sizes = [8, 22], strides = [1, 1]} : vector<16x22xf32> to vector<8x22xf32>
    %87 = arith.addf %26, %86 : vector<8x22xf32>
    %c0_50 = arith.constant 0 : index
    %c4_51 = arith.constant 4 : index
    %88 = vector.load %arg18[%c0_50, %c4_51] : memref<8x30xf32, #tpu.memory_space<vmem>>, vector<8x22xf32>
    tpu.vector_store %arg18[%c0_50, %c4_51], %85 {strides = array<i32>} : memref<8x30xf32, #tpu.memory_space<vmem>>, vector<8x22xf32>,
    %c0_52 = arith.constant 0 : index
    %c2 = arith.constant 2 : index
    %89 = vector.load %arg18[%c0_52, %c2] : memref<8x30xf32, #tpu.memory_space<vmem>>, vector<8x22xf32>
    %c0_53 = arith.constant 0 : index
    %c4_54 = arith.constant 4 : index
    %90 = vector.load %arg18[%c0_53, %c4_54] : memref<8x30xf32, #tpu.memory_space<vmem>>, vector<8x22xf32>
    %c0_55 = arith.constant 0 : index
    %c6 = arith.constant 6 : index
    %91 = vector.load %arg18[%c0_55, %c6] : memref<8x30xf32, #tpu.memory_space<vmem>>, vector<8x22xf32>
    %92 = tpu.concatenate %89, %90, %91 in 0 : vector<8x22xf32>, vector<8x22xf32>, vector<8x22xf32> -> vector<24x22xf32>
    %c1 = arith.constant 1 : index
    %c0_56 = arith.constant 0 : index
    %c0_57 = arith.constant 0 : index
    %93 = vector.load %arg9[%c1, %c0_56, %c0_57] : memref<3x16x24xf32, #tpu.memory_space<vmem>>, vector<1x16x24xf32>
    %94 = vector.shape_cast %93 : vector<1x16x24xf32> to vector<16x24xf32>
    %95 = arith.truncf %94 : vector<16x24xf32> to vector<16x24xbf16>
    %96 = arith.truncf %92 : vector<24x22xf32> to vector<24x22xbf16>
    %cst_58 = arith.constant dense<0.000000e+00> : vector<16x22xf32>
    %97 = tpu.matmul %95, %96, %cst_58 {dimension_numbers = #tpu.dot_dimension_numbers<[1], [0], [0], [1], [0, 0, 1, 1], [], []>} : vector<16x24xbf16>, vector<24x22xbf16>, vector<16x22xf32> -> vector<16x22xf32>
    %c1_59 = arith.constant 1 : index
    %c0_60 = arith.constant 0 : index
    %c0_61 = arith.constant 0 : index
    %98 = vector.load %arg10[%c1_59, %c0_60, %c0_61] : memref<3x16x1xf32, #tpu.memory_space<vmem>>, vector<1x16x1xf32>
    %99 = vector.shape_cast %98 : vector<1x16x1xf32> to vector<16x1xf32>
    %100 = vector.broadcast %99 : vector<16x1xf32> to vector<16x22xf32>
    %101 = arith.addf %97, %100 : vector<16x22xf32>
    %c1_62 = arith.constant 1 : index
    %c0_63 = arith.constant 0 : index
    %c0_64 = arith.constant 0 : index
    %102 = vector.load %arg7[%c1_62, %c0_63, %c0_64] : memref<3x16x8xf32, #tpu.memory_space<vmem>>, vector<1x16x8xf32>
    %103 = vector.shape_cast %102 : vector<1x16x8xf32> to vector<16x8xf32>
    %104 = arith.truncf %103 : vector<16x8xf32> to vector<16x8xbf16>
    %105 = arith.truncf %16 : vector<8x22xf32> to vector<8x22xbf16>
    %cst_65 = arith.constant dense<0.000000e+00> : vector<16x22xf32>
    %106 = tpu.matmul %104, %105, %cst_65 {dimension_numbers = #tpu.dot_dimension_numbers<[1], [0], [0], [1], [0, 0, 1, 1], [], []>} : vector<16x8xbf16>, vector<8x22xbf16>, vector<16x22xf32> -> vector<16x22xf32>
    %c1_66 = arith.constant 1 : index
    %c0_67 = arith.constant 0 : index
    %c0_68 = arith.constant 0 : index
    %107 = vector.load %arg8[%c1_66, %c0_67, %c0_68] : memref<3x16x1xf32, #tpu.memory_space<vmem>>, vector<1x16x1xf32>
    %108 = vector.shape_cast %107 : vector<1x16x1xf32> to vector<16x1xf32>
    %109 = vector.broadcast %108 : vector<16x1xf32> to vector<16x22xf32>
    %110 = arith.addf %106, %109 : vector<16x22xf32>
    %c1_69 = arith.constant 1 : index
    %c0_70 = arith.constant 0 : index
    %c0_71 = arith.constant 0 : index
    %111 = vector.load %arg11[%c1_69, %c0_70, %c0_71] : memref<3x16x1xf32, #tpu.memory_space<vmem>>, vector<1x16x1xf32>
    %112 = vector.shape_cast %111 : vector<1x16x1xf32> to vector<16x1xf32>
    %113 = vector.broadcast %12 : f32 to vector<16x1xf32>
    %114 = arith.mulf %113, %112 : vector<16x1xf32>
    %c1_72 = arith.constant 1 : index
    %c0_73 = arith.constant 0 : index
    %c0_74 = arith.constant 0 : index
    %115 = vector.load %arg12[%c1_72, %c0_73, %c0_74] : memref<3x16x1xf32, #tpu.memory_space<vmem>>, vector<1x16x1xf32>
    %116 = vector.shape_cast %115 : vector<1x16x1xf32> to vector<16x1xf32>
    %117 = arith.addf %114, %116 : vector<16x1xf32>
    %118 = arith.addf %101, %110 : vector<16x22xf32>
    %119 = vector.broadcast %117 : vector<16x1xf32> to vector<16x22xf32>
    %120 = arith.addf %118, %119 : vector<16x22xf32>
    %121 = vector.extract_strided_slice %120 {offsets = [0, 0], sizes = [8, 22], strides = [1, 1]} : vector<16x22xf32> to vector<8x22xf32>
    %122 = math.tanh %121 : vector<8x22xf32>
    %123 = vector.extract_strided_slice %120 {offsets = [8, 0], sizes = [8, 22], strides = [1, 1]} : vector<16x22xf32> to vector<8x22xf32>
    %cst_75 = arith.constant 0.000000e+00 : f32
    %124 = vector.broadcast %cst_75 : f32 to vector<8x22xf32>
    %125 = arith.subf %124, %123 : vector<8x22xf32>
    %126 = math.exp %125 : vector<8x22xf32>
    %cst_76 = arith.constant 1.000000e+00 : f32
    %127 = vector.broadcast %cst_76 : f32 to vector<8x22xf32>
    %128 = arith.addf %127, %126 : vector<8x22xf32>
    %cst_77 = arith.constant 1.000000e+00 : f32
    %129 = vector.broadcast %cst_77 : f32 to vector<8x22xf32>
    %130 = arith.divf %129, %128 : vector<8x22xf32>
    %131 = arith.mulf %122, %130 : vector<8x22xf32>
    %c1_78 = arith.constant 1 : index
    %c0_79 = arith.constant 0 : index
    %c0_80 = arith.constant 0 : index
    %132 = vector.load %arg13[%c1_78, %c0_79, %c0_80] : memref<3x16x8xf32, #tpu.memory_space<vmem>>, vector<1x16x8xf32>
    %133 = vector.shape_cast %132 : vector<1x16x8xf32> to vector<16x8xf32>
    %134 = arith.truncf %133 : vector<16x8xf32> to vector<16x8xbf16>
    %135 = arith.truncf %131 : vector<8x22xf32> to vector<8x22xbf16>
    %cst_81 = arith.constant dense<0.000000e+00> : vector<16x22xf32>
    %136 = tpu.matmul %134, %135, %cst_81 {dimension_numbers = #tpu.dot_dimension_numbers<[1], [0], [0], [1], [0, 0, 1, 1], [], []>} : vector<16x8xbf16>, vector<8x22xbf16>, vector<16x22xf32> -> vector<16x22xf32>
    %c1_82 = arith.constant 1 : index
    %c0_83 = arith.constant 0 : index
    %c0_84 = arith.constant 0 : index
    %137 = vector.load %arg14[%c1_82, %c0_83, %c0_84] : memref<3x16x1xf32, #tpu.memory_space<vmem>>, vector<1x16x1xf32>
    %138 = vector.shape_cast %137 : vector<1x16x1xf32> to vector<16x1xf32>
    %139 = vector.broadcast %138 : vector<16x1xf32> to vector<16x22xf32>
    %140 = arith.addf %136, %139 : vector<16x22xf32>
    %141 = vector.extract_strided_slice %140 {offsets = [0, 0], sizes = [8, 22], strides = [1, 1]} : vector<16x22xf32> to vector<8x22xf32>
    %142 = arith.addf %85, %141 : vector<8x22xf32>
    %143 = vector.broadcast %10 : vector<1x22xf32> to vector<8x22xf32>
    %144 = arith.mulf %142, %143 : vector<8x22xf32>
    %145 = vector.extract_strided_slice %140 {offsets = [8, 0], sizes = [8, 22], strides = [1, 1]} : vector<16x22xf32> to vector<8x22xf32>
    %146 = arith.addf %87, %145 : vector<8x22xf32>
    %c0_85 = arith.constant 0 : index
    %c4_86 = arith.constant 4 : index
    %147 = vector.load %arg18[%c0_85, %c4_86] : memref<8x30xf32, #tpu.memory_space<vmem>>, vector<8x22xf32>
    tpu.vector_store %arg18[%c0_85, %c4_86], %144 {strides = array<i32>} : memref<8x30xf32, #tpu.memory_space<vmem>>, vector<8x22xf32>,
    %c0_87 = arith.constant 0 : index
    %c0_88 = arith.constant 0 : index
    %148 = vector.load %arg18[%c0_87, %c0_88] : memref<8x30xf32, #tpu.memory_space<vmem>>, vector<8x22xf32>
    %c0_89 = arith.constant 0 : index
    %c4_90 = arith.constant 4 : index
    %149 = vector.load %arg18[%c0_89, %c4_90] : memref<8x30xf32, #tpu.memory_space<vmem>>, vector<8x22xf32>
    %c0_91 = arith.constant 0 : index
    %c8 = arith.constant 8 : index
    %150 = vector.load %arg18[%c0_91, %c8] : memref<8x30xf32, #tpu.memory_space<vmem>>, vector<8x22xf32>
    %151 = tpu.concatenate %148, %149, %150 in 0 : vector<8x22xf32>, vector<8x22xf32>, vector<8x22xf32> -> vector<24x22xf32>
    %c2_92 = arith.constant 2 : index
    %c0_93 = arith.constant 0 : index
    %c0_94 = arith.constant 0 : index
    %152 = vector.load %arg9[%c2_92, %c0_93, %c0_94] : memref<3x16x24xf32, #tpu.memory_space<vmem>>, vector<1x16x24xf32>
    %153 = vector.shape_cast %152 : vector<1x16x24xf32> to vector<16x24xf32>
    %154 = arith.truncf %153 : vector<16x24xf32> to vector<16x24xbf16>
    %155 = arith.truncf %151 : vector<24x22xf32> to vector<24x22xbf16>
    %cst_95 = arith.constant dense<0.000000e+00> : vector<16x22xf32>
    %156 = tpu.matmul %154, %155, %cst_95 {dimension_numbers = #tpu.dot_dimension_numbers<[1], [0], [0], [1], [0, 0, 1, 1], [], []>} : vector<16x24xbf16>, vector<24x22xbf16>, vector<16x22xf32> -> vector<16x22xf32>
    %c2_96 = arith.constant 2 : index
    %c0_97 = arith.constant 0 : index
    %c0_98 = arith.constant 0 : index
    %157 = vector.load %arg10[%c2_96, %c0_97, %c0_98] : memref<3x16x1xf32, #tpu.memory_space<vmem>>, vector<1x16x1xf32>
    %158 = vector.shape_cast %157 : vector<1x16x1xf32> to vector<16x1xf32>
    %159 = vector.broadcast %158 : vector<16x1xf32> to vector<16x22xf32>
    %160 = arith.addf %156, %159 : vector<16x22xf32>
    %c2_99 = arith.constant 2 : index
    %c0_100 = arith.constant 0 : index
    %c0_101 = arith.constant 0 : index
    %161 = vector.load %arg7[%c2_99, %c0_100, %c0_101] : memref<3x16x8xf32, #tpu.memory_space<vmem>>, vector<1x16x8xf32>
    %162 = vector.shape_cast %161 : vector<1x16x8xf32> to vector<16x8xf32>
    %163 = arith.truncf %162 : vector<16x8xf32> to vector<16x8xbf16>
    %164 = arith.truncf %16 : vector<8x22xf32> to vector<8x22xbf16>
    %cst_102 = arith.constant dense<0.000000e+00> : vector<16x22xf32>
    %165 = tpu.matmul %163, %164, %cst_102 {dimension_numbers = #tpu.dot_dimension_numbers<[1], [0], [0], [1], [0, 0, 1, 1], [], []>} : vector<16x8xbf16>, vector<8x22xbf16>, vector<16x22xf32> -> vector<16x22xf32>
    %c2_103 = arith.constant 2 : index
    %c0_104 = arith.constant 0 : index
    %c0_105 = arith.constant 0 : index
    %166 = vector.load %arg8[%c2_103, %c0_104, %c0_105] : memref<3x16x1xf32, #tpu.memory_space<vmem>>, vector<1x16x1xf32>
    %167 = vector.shape_cast %166 : vector<1x16x1xf32> to vector<16x1xf32>
    %168 = vector.broadcast %167 : vector<16x1xf32> to vector<16x22xf32>
    %169 = arith.addf %165, %168 : vector<16x22xf32>
    %c2_106 = arith.constant 2 : index
    %c0_107 = arith.constant 0 : index
    %c0_108 = arith.constant 0 : index
    %170 = vector.load %arg11[%c2_106, %c0_107, %c0_108] : memref<3x16x1xf32, #tpu.memory_space<vmem>>, vector<1x16x1xf32>
    %171 = vector.shape_cast %170 : vector<1x16x1xf32> to vector<16x1xf32>
    %172 = vector.broadcast %12 : f32 to vector<16x1xf32>
    %173 = arith.mulf %172, %171 : vector<16x1xf32>
    %c2_109 = arith.constant 2 : index
    %c0_110 = arith.constant 0 : index
    %c0_111 = arith.constant 0 : index
    %174 = vector.load %arg12[%c2_109, %c0_110, %c0_111] : memref<3x16x1xf32, #tpu.memory_space<vmem>>, vector<1x16x1xf32>
    %175 = vector.shape_cast %174 : vector<1x16x1xf32> to vector<16x1xf32>
    %176 = arith.addf %173, %175 : vector<16x1xf32>
    %177 = arith.addf %160, %169 : vector<16x22xf32>
    %178 = vector.broadcast %176 : vector<16x1xf32> to vector<16x22xf32>
    %179 = arith.addf %177, %178 : vector<16x22xf32>
    %180 = vector.extract_strided_slice %179 {offsets = [0, 0], sizes = [8, 22], strides = [1, 1]} : vector<16x22xf32> to vector<8x22xf32>
    %181 = math.tanh %180 : vector<8x22xf32>
    %182 = vector.extract_strided_slice %179 {offsets = [8, 0], sizes = [8, 22], strides = [1, 1]} : vector<16x22xf32> to vector<8x22xf32>
    %cst_112 = arith.constant 0.000000e+00 : f32
    %183 = vector.broadcast %cst_112 : f32 to vector<8x22xf32>
    %184 = arith.subf %183, %182 : vector<8x22xf32>
    %185 = math.exp %184 : vector<8x22xf32>
    %cst_113 = arith.constant 1.000000e+00 : f32
    %186 = vector.broadcast %cst_113 : f32 to vector<8x22xf32>
    %187 = arith.addf %186, %185 : vector<8x22xf32>
    %cst_114 = arith.constant 1.000000e+00 : f32
    %188 = vector.broadcast %cst_114 : f32 to vector<8x22xf32>
    %189 = arith.divf %188, %187 : vector<8x22xf32>
    %190 = arith.mulf %181, %189 : vector<8x22xf32>
    %c2_115 = arith.constant 2 : index
    %c0_116 = arith.constant 0 : index
    %c0_117 = arith.constant 0 : index
    %191 = vector.load %arg13[%c2_115, %c0_116, %c0_117] : memref<3x16x8xf32, #tpu.memory_space<vmem>>, vector<1x16x8xf32>
    %192 = vector.shape_cast %191 : vector<1x16x8xf32> to vector<16x8xf32>
    %193 = vector.extract_strided_slice %192 {offsets = [0, 0], sizes = [8, 8], strides = [1, 1]} : vector<16x8xf32> to vector<8x8xf32>
    %194 = arith.truncf %193 : vector<8x8xf32> to vector<8x8xbf16>
    %195 = arith.truncf %190 : vector<8x22xf32> to vector<8x22xbf16>
    %cst_118 = arith.constant dense<0.000000e+00> : vector<8x22xf32>
    %196 = tpu.matmul %194, %195, %cst_118 {dimension_numbers = #tpu.dot_dimension_numbers<[1], [0], [0], [1], [0, 0, 1, 1], [], []>} : vector<8x8xbf16>, vector<8x22xbf16>, vector<8x22xf32> -> vector<8x22xf32>
    %c2_119 = arith.constant 2 : index
    %c0_120 = arith.constant 0 : index
    %c0_121 = arith.constant 0 : index
    %197 = vector.load %arg14[%c2_119, %c0_120, %c0_121] : memref<3x16x1xf32, #tpu.memory_space<vmem>>, vector<1x16x1xf32>
    %198 = vector.shape_cast %197 : vector<1x16x1xf32> to vector<16x1xf32>
    %199 = vector.extract_strided_slice %198 {offsets = [0, 0], sizes = [8, 1], strides = [1, 1]} : vector<16x1xf32> to vector<8x1xf32>
    %200 = vector.broadcast %199 : vector<8x1xf32> to vector<8x22xf32>
    %201 = arith.addf %196, %200 : vector<8x22xf32>
    %202 = arith.addf %146, %201 : vector<8x22xf32>
    %c0_122 = arith.constant 0 : index
    %c0_123 = arith.constant 0 : index
    %203 = vector.load %arg15[%c0_122, %c0_123] : memref<4x8xf32, #tpu.memory_space<vmem>>, vector<4x8xf32>
    %204 = arith.truncf %203 : vector<4x8xf32> to vector<4x8xbf16>
    %205 = arith.truncf %202 : vector<8x22xf32> to vector<8x22xbf16>
    %cst_124 = arith.constant dense<0.000000e+00> : vector<4x22xf32>
    %206 = tpu.matmul %204, %205, %cst_124 {dimension_numbers = #tpu.dot_dimension_numbers<[1], [0], [0], [1], [0, 0, 1, 1], [], []>} : vector<4x8xbf16>, vector<8x22xbf16>, vector<4x22xf32> -> vector<4x22xf32>
    %c0_125 = arith.constant 0 : index
    %c0_126 = arith.constant 0 : index
    %207 = vector.load %arg16[%c0_125, %c0_126] : memref<4x1xf32, #tpu.memory_space<vmem>>, vector<4x1xf32>
    %208 = vector.broadcast %207 : vector<4x1xf32> to vector<4x22xf32>
    %209 = arith.addf %206, %208 : vector<4x22xf32>
    %210 = vector.extract_strided_slice %209 {offsets = [0, 7], sizes = [4, 8], strides = [1, 1]} : vector<4x22xf32> to vector<4x8xf32>
    %c0_127 = arith.constant 0 : index
    %c0_128 = arith.constant 0 : index
    %c0_129 = arith.constant 0 : index
    %c0_130 = arith.constant 0 : index
    %211 = vector.load %arg17[%c0_127, %c0_128, %c0_129, %c0_130] : memref<1x1x4x8xf32, #tpu.memory_space<vmem>>, vector<1x1x4x8xf32>
    %212 = vector.shape_cast %211 : vector<1x1x4x8xf32> to vector<4x8xf32>
    %213 = vector.shape_cast %210 : vector<4x8xf32> to vector<1x1x4x8xf32>
    tpu.vector_store %arg17[%c0_127, %c0_128, %c0_129, %c0_130], %213 {strides = array<i32>} : memref<1x1x4x8xf32, #tpu.memory_space<vmem>>, vector<1x1x4x8xf32>,
    return
  }
  func.func @transform_0(%arg0: i32, %arg1: i32) -> i32 {
    %c0_i32 = arith.constant 0 : i32
    %c0_i32_0 = arith.constant 0 : i32
    return %c0_i32 : i32
  }
  func.func @transform_1(%arg0: i32, %arg1: i32) -> (i32, i32, i32, i32) {
    %c0_i32 = arith.constant 0 : i32
    %c0_i32_0 = arith.constant 0 : i32
    %c0_i32_1 = arith.constant 0 : i32
    return %arg0, %arg1, %c0_i32, %c0_i32_0 : i32, i32, i32, i32
  }
  func.func @transform_2(%arg0: i32, %arg1: i32) -> (i32, i32, i32, i32) {
    %c0_i32 = arith.constant 0 : i32
    %c0_i32_0 = arith.constant 0 : i32
    %c0_i32_1 = arith.constant 0 : i32
    return %arg0, %arg1, %c0_i32, %c0_i32_0 : i32, i32, i32, i32
  }
  func.func @transform_3(%arg0: i32, %arg1: i32) -> (i32, i32) {
    %c0_i32 = arith.constant 0 : i32
    %c0_i32_0 = arith.constant 0 : i32
    %c0_i32_1 = arith.constant 0 : i32
    return %c0_i32, %c0_i32_0 : i32, i32
  }
  func.func @transform_4(%arg0: i32, %arg1: i32) -> (i32, i32) {
    %c0_i32 = arith.constant 0 : i32
    %c0_i32_0 = arith.constant 0 : i32
    %c0_i32_1 = arith.constant 0 : i32
    return %c0_i32, %c0_i32_0 : i32, i32
  }
  func.func @transform_5(%arg0: i32, %arg1: i32) -> (i32, i32, i32) {
    %c0_i32 = arith.constant 0 : i32
    %c0_i32_0 = arith.constant 0 : i32
    %c0_i32_1 = arith.constant 0 : i32
    %c0_i32_2 = arith.constant 0 : i32
    return %c0_i32, %c0_i32_0, %c0_i32_1 : i32, i32, i32
  }
  func.func @transform_6(%arg0: i32, %arg1: i32) -> (i32, i32, i32) {
    %c0_i32 = arith.constant 0 : i32
    %c0_i32_0 = arith.constant 0 : i32
    %c0_i32_1 = arith.constant 0 : i32
    %c0_i32_2 = arith.constant 0 : i32
    return %c0_i32, %c0_i32_0, %c0_i32_1 : i32, i32, i32
  }
  func.func @transform_7(%arg0: i32, %arg1: i32) -> (i32, i32, i32) {
    %c0_i32 = arith.constant 0 : i32
    %c0_i32_0 = arith.constant 0 : i32
    %c0_i32_1 = arith.constant 0 : i32
    %c0_i32_2 = arith.constant 0 : i32
    return %c0_i32, %c0_i32_0, %c0_i32_1 : i32, i32, i32
  }
  func.func @transform_8(%arg0: i32, %arg1: i32) -> (i32, i32, i32) {
    %c0_i32 = arith.constant 0 : i32
    %c0_i32_0 = arith.constant 0 : i32
    %c0_i32_1 = arith.constant 0 : i32
    %c0_i32_2 = arith.constant 0 : i32
    return %c0_i32, %c0_i32_0, %c0_i32_1 : i32, i32, i32
  }
  func.func @transform_9(%arg0: i32, %arg1: i32) -> (i32, i32, i32) {
    %c0_i32 = arith.constant 0 : i32
    %c0_i32_0 = arith.constant 0 : i32
    %c0_i32_1 = arith.constant 0 : i32
    %c0_i32_2 = arith.constant 0 : i32
    return %c0_i32, %c0_i32_0, %c0_i32_1 : i32, i32, i32
  }
  func.func @transform_10(%arg0: i32, %arg1: i32) -> (i32, i32, i32) {
    %c0_i32 = arith.constant 0 : i32
    %c0_i32_0 = arith.constant 0 : i32
    %c0_i32_1 = arith.constant 0 : i32
    %c0_i32_2 = arith.constant 0 : i32
    return %c0_i32, %c0_i32_0, %c0_i32_1 : i32, i32, i32
  }
  func.func @transform_11(%arg0: i32, %arg1: i32) -> (i32, i32, i32) {
    %c0_i32 = arith.constant 0 : i32
    %c0_i32_0 = arith.constant 0 : i32
    %c0_i32_1 = arith.constant 0 : i32
    %c0_i32_2 = arith.constant 0 : i32
    return %c0_i32, %c0_i32_0, %c0_i32_1 : i32, i32, i32
  }
  func.func @transform_12(%arg0: i32, %arg1: i32) -> (i32, i32, i32) {
    %c0_i32 = arith.constant 0 : i32
    %c0_i32_0 = arith.constant 0 : i32
    %c0_i32_1 = arith.constant 0 : i32
    %c0_i32_2 = arith.constant 0 : i32
    return %c0_i32, %c0_i32_0, %c0_i32_1 : i32, i32, i32
  }
  func.func @transform_13(%arg0: i32, %arg1: i32) -> (i32, i32) {
    %c0_i32 = arith.constant 0 : i32
    %c0_i32_0 = arith.constant 0 : i32
    %c0_i32_1 = arith.constant 0 : i32
    return %c0_i32, %c0_i32_0 : i32, i32
  }
  func.func @transform_14(%arg0: i32, %arg1: i32) -> (i32, i32) {
    %c0_i32 = arith.constant 0 : i32
    %c0_i32_0 = arith.constant 0 : i32
    %c0_i32_1 = arith.constant 0 : i32
    return %c0_i32, %c0_i32_0 : i32, i32
  }
  func.func @transform_15(%arg0: i32, %arg1: i32) -> (i32, i32, i32, i32) {
    %c0_i32 = arith.constant 0 : i32
    %c0_i32_0 = arith.constant 0 : i32
    %c0_i32_1 = arith.constant 0 : i32
    return %arg0, %arg1, %c0_i32, %c0_i32_0 : i32, i32, i32, i32
  }
}

</mosaic_0001>

<bundles_post_ra>
// kernel: tpu_custom_call.1
= control target key start
LH: loop header
LB: loop body
LE: loop exit
PB: predicated region body
PF: predicated region fallthrough
CT: control target
= control target key end

     0   :  { %s2442_s0 = inlined_call_operand.vmem [shape: f32[2], index: 0, kind: input, shape index: {}]   ;;  %s2443_s1 = inlined_call_operand.vmem [shape: f32[2,2,4,22], index: 1, kind: input, shape index: {}]   ;;  %s2444_s2 = inlined_call_operand.vmem [shape: f32[2,2,8,22], index: 2, kind: input, shape index: {}]   ;;  %s2445_s3 = inlined_call_operand.vmem [shape: f32[8,4], index: 3, kind: input, shape index: {}]   ;;  %s2446_s4 = inlined_call_operand.vmem [shape: f32[8,1], index: 4, kind: input, shape index: {}]   ;;  %s2447_s5 = inlined_call_operand.vmem [shape: f32[3,16,8], index: 5, kind: input, shape index: {}]   ;;  %s2448_s6 = inlined_call_operand.vmem [shape: f32[3,16,1], index: 6, kind: input, shape index: {}]   ;;  %s2449_s7 = inlined_call_operand.vmem [shape: f32[3,16,24], index: 7, kind: input, shape index: {}]   ;;  %s2450_s8 = inlined_call_operand.vmem [shape: f32[3,16,1], index: 8, kind: input, shape index: {}]   ;;  %s2451_s9 = inlined_call_operand.vmem [shape: f32[3,16,1], index: 9, kind: input, shape index: {}]   ;;  %s2452_s10 = inlined_call_operand.vmem [shape: f32[3,16,1], index: 10, kind: input, shape index: {}]   ;;  %s2453_s11 = inlined_call_operand.vmem [shape: f32[3,16,8], index: 11, kind: input, shape index: {}]   ;;  %s2454_s12 = inlined_call_operand.vmem [shape: f32[3,16,1], index: 12, kind: input, shape index: {}]   ;;  %s2455_s13 = inlined_call_operand.vmem [shape: f32[4,8], index: 13, kind: input, shape index: {}]   ;;  %s2456_s14 = inlined_call_operand.vmem [shape: f32[4,1], index: 14, kind: input, shape index: {}]   ;;  %s2457_s15 = inlined_call_operand.hbm [shape: f32[2,2,4,8], index: 15, kind: output, shape index: {}]  }
   0x1   :  { %2470 = sst [smem:[#allocation14_spill]] %s2442_s0 }
   0x2   :  { %2471 = sst [smem:[#allocation15_spill]] %s2443_s1 }
   0x3   :  { %2472 = sst [smem:[#allocation16_spill]] %s2444_s2 }
   0x4   :  { %2473 = sst [smem:[#allocation17_spill]] %s2455_s13 }
   0x5   :  { %2474 = sst [smem:[#allocation18_spill]] %s2456_s14 }
   0x6   :  { %2475 = sst [smem:[#allocation19_spill]] %s2457_s15 }
   0x7   :  { %20 = vsyncpa [#allocation5], 0 }
   0x8   :  { %21 = vsyncpa [#allocation4], 0 }
   0x9   :  { %23 = vsyncpa [#allocation4 + $0x1], 0  ;;  %s2025_s18 = smov 0   ;;  %s2027_s19 = smov 0  }
   0xa   :  { %s2029_s20 = smov 0   ;;  %s2031_s21 = smov 0  }
   0xb   :  { %s2033_s22 = smov 0   ;;  %s2035_s23 = smov 0  }
   0xc   :  { %s2037_s24 = smov 0   ;;  %s2039_s25 = smov 0  }
   0xd LB: > { %2476 = sst [smem:[#allocation9_spill]] %s1903_s18  ;;  %s1549_s26 = sadd.s32 4294967295, %s1931_s25   ;;  %s1931_s25 = sphi %s2039_s25, %s2505_s25   ;;  %s1927_s24 = sphi %s2037_s24, %s2504_s24   ;;  %s1923_s23 = sphi %s2035_s23, %s2499_s23   ;;  %s1919_s22 = sphi %s2033_s22, %s2503_s22   ;;  %s1915_s21 = sphi %s2031_s21, %s2498_s21   ;;  %s1911_s20 = sphi %s2029_s20, %s2502_s20   ;;  %s1907_s19 = sphi %s2027_s19, %s2501_s19   ;;  %s1903_s18 = sphi %s2025_s18, %s2500_s18  }
   0xe   : > { %2477 = sst [smem:[#allocation10_spill]] %s1923_s23  ;;  %s1550_s27 = sadd.s32 4294967294, %s1931_s25  }
   0xf   : > { %2478 = sst [smem:[#allocation11_spill]] %s1931_s25  ;;  %s38_s28 = sadd.s32 1, %s1923_s23 }
  0x10   : > { %s41_s29 = sadd.s32 1, %s1927_s24  ;;  %p39_p0 = scmp.ge.s32.totalorder %s38_s28, 2 }
  0x11   : > { %s379_s30 = sadd.s32 1, %s1911_s20  ;;  %p389_p1 = scmp.ne.s32.totalorder %s1911_s20, %s1907_s19 }
  0x12   : > { %p390_p2 = scmp.eq.s32.totalorder %s1549_s26, 3  ;;  %s2507_s28 = smov (%p39_p0, %s38_s28), 0 }
  0x13   : > { %2479 = sst [smem:[#allocation12_spill]] %s2507_s28  ;;  %s2509_s29 = smov (!%p39_p0, %s41_s29), %s1927_s24 }
  0x14   : > { %s375_s16 = ssub.s32 %s1923_s23, %s2507_s28  ;;  %p2077_p3 = por %p390_p2, %p389_p1 }
  0x15   : > { %p43_p4 = scmp.ge.s32.totalorder %s2509_s29, 2  ;;  %p395_p5 = scmp.ne.s32.totalorder %s1907_s19, %s1903_s18 }
  0x16   : > { %p396_p6 = scmp.eq.s32.totalorder %s1550_s27, 3  ;;  %p1551_p7 = scmp.ge.s32.totalorder %s1931_s25, 1 }
  0x17   : > { %s2511_s29 = smov (%p43_p4, %s2509_s29), 0  ;;  %p403_p9 = scmp.lt.s32.totalorder %s1931_s25, 5 }
  0x18   : > { %p2086_p8 = por %p396_p6, %p395_p5  ;;  %s374_s13 = ssub.s32 %s1927_s24, %s2511_s29 }
  0x19   : > { %s376_s14 = sor.u32 %s375_s16, %s374_s13  ;;  %p2093_p10 = pnand %p1551_p7, %p403_p9 }
  0x1a   : > { %s2481_s15 = scalar_select %p2086_p8, 1, 0 }
  0x1b   : > { %p377_p11 = scmp.eq.s32.totalorder %s376_s14, 0  ;;  %p2097_p12 = scmp.eq.s32.totalorder %s1549_s26, 0 }
  0x1c   : > { %2482 = sst [smem:[#allocation13_spill]] %s2481_s15  ;;  %p1712_p13 = pneg %p2093_p10 }
  0x1d   : > { %s2485_s0 = sld [smem:[#allocation14_spill]] }
  0x1e   : > { %s2107_s25 = scalar_select %p377_p11, %s1911_s20, %s379_s30  }
  0x1f   : > { %p1713_p0 = pnand %p2097_p12, %p1712_p13 }
  0x21   : > { %p1820_p2 = pneg %p1713_p0 }
  0x23   : > { %s416_s15 = sshll.u32 %s2485_s0, 4  ;;  %s417_s15 = int_to_ptr.vmem [resolvable:$true] %s416_s15 }
  0x24   : > { %s1818_s13 = scalar_lea.vmem %s417_s15, 16  ;;  %p1826_p6 = scmp.lt.s32.totalorder %s417_s15, %s417_s15 }
  0x25   : > { %p1819_p1 = scmp.ne.s32.totalorder %s417_s15, %s1818_s13  ;;  %p1827_p7 = scmp.lt.s32.totalorder %s1818_s13, %s1818_s13 }
  0x27   : > { %p1821_p4 = pnand %p1820_p2, %p1819_p1  ;;  %p1828_p9 = por %p1827_p7, %p1826_p6 }
  0x29   : > { %p1822_p5 = pneg %p1821_p4 }
  0x2b   : > { %p1829_p8 = pnand %p1828_p9, %p1822_p5 }
  0x2d   : > { %1832 = shalt.err (!%p1829_p8)
}
  0x2e   : > { %s1933_s14 = smov [#allocation3]   ;;  %487 = sbr.rel (%p2093_p10) target bundleno = 3028 (0xbd4), region = 80 }
  0x2f   : > { %1715 = dma.vmem_to_smem (!%p1713_p0), %s417_s15, 16, %s1933_s14, [#allocation5]  }
  0x35   : > { %1894 = dma.done.wait (%p2097_p12), [#allocation5], 16  }
  0x36   : > { %1896 = vsyncadd (%p2097_p12), [#allocation5], 4294967280 }
  0x37   : > { %493 = sfence }
  0x38   : > { %p547_p11 = scmp.lt.s32.totalorder %s1919_s22, 1  ;;  %p549_p13 = scmp.lt.s32.totalorder %s1915_s21, 1  ;;  %v1934_v0 = vmov 0.0   ;;  %vm1935_vm0 = vmmov 0   ;;  %v582_v1 = vld [vmem:[%s2446_s4] sm:$0xff]  ;;  %v1936_v2 = vmov 0   ;;  %v564_v8 = vlaneseq }
  0x39   : > { %1634 = vmatprep.subr.bf16.mxu0 %v1934_v0  ;;  %1636 = vmatprep.mubr.msk.bf16.mxu0 %vm1935_vm0, %v1934_v0  ;;  %s2486_s1 = sld [smem:[#allocation15_spill]]  ;;  %vm592_vm1 = vcmask 1041408   ;;  %v579_v4 = vld [vmem:[%s2445_s3] sm:$0xff]  ;;  %vm588_vm2 = vcmask 31744   ;;  %vm637_vm3 = vcmask 244736   ;;  %s2487_s2 = sld [smem:[#allocation16_spill]] }
  0x3a   : > { %s548_s23 = scalar_select %p547_p11, %s1919_s22, 1  ;;  %1798 = vset.pattern.permute.xlu0 %v1936_v2  ;;  %1640 = vmatprep.subr.bf16.mxu1 %v1934_v0  ;;  %v580_v7 = vpack.c.bf16 %v579_v4, %v579_v4  ;;  %638 = vst.msk [vmem:[#allocation2] sm:$0xff] %vm637_vm3, %v1934_v0  ;;  %v565_v9 = vand.u32 127, %v564_v8  ;;  %vm681_vm7 = vcmask 1043456   ;;  %v726_v21 = vld [vmem:[%s2447_s5] sm:$0xff]  ;;  %v727_v22 = vld [vmem:[%s2447_s5 + $0x8] sm:$0xff] }
  0x3b   : > { %s550_s26 = scalar_select %p549_p13, %s1915_s21, 1  ;;  %585 = vperm.xlu0 %1798, %v582_v1   ;;  %1644 = vmatprep.mubr.msk.bf16.mxu1 %vm1935_vm0, %v1934_v0  ;;  %v728_v25 = vpack.c.bf16 %v727_v22, %v726_v21  ;;  %vm742_vm8 = vcmask 64512   ;;  %vm643_vm9 = vcmask 212000   ;;  %v791_v29 = vld [vmem:[%s2451_s9 + $0x8] sm:$0xff]  ;;  %v730_v38 = vld [vmem:[%s2448_s6] sm:$0xff]  ;;  %vm677_vm10 = vcmask 195584  }
  0x3c   : > { %s1557_s28 = sshll.u32 %s548_s23, 1  ;;  %1799 = vset.pattern.permute.xlu1 %v1936_v2  ;;  %s1561_s23 = sshll.u32 %s1915_s21, 3  ;;  %v659_v34 = vld [vmem:[%s2450_s8 + $0x8] sm:$0xff]  ;;  %v825_v41 = vld [vmem:[%s2454_s12] sm:$0xff]  ;;  %vm1423_vm11 = vcmask 60416  }
  0x3d   : > { %s2130_s30 = sadd.s32 %s1557_s28, %s550_s26  ;;  %s567_s26 = ssub.s32 7, %s1561_s23  ;;  %v796_v35 = vld [vmem:[%s2452_s10 + $0x8] sm:$0xff]  ;;  %v790_v43 = vld [vmem:[%s2451_s9] sm:$0xff] }
  0x3e   : > { %s1558_s16 = sshll.u32 %s2130_s30, 2  ;;  %s570_s28 = ssub.s32 23, %s1561_s23  ;;  %v568_v10 = vstv %s567_s26  ;;  %v731_v42 = vld [vmem:[%s2448_s6 + $0x8] sm:$0xff]  ;;  %v658_v45 = vld [vmem:[%s2450_s8] sm:$0xff] }
  0x3f   : > { %s554_s14 = scalar_lea.vmem %s2486_s1, %s1558_s16  ;;  %v571_v11 = vstv %s570_s28  ;;  %vm569_vm4 = vcmp.ge.s32.totalorder %v565_v9, %v568_v10  ;;  %s1560_s16 = sshll.u32 %s2130_s30, 3  ;;  %v795_v46 = vld [vmem:[%s2452_s10] sm:$0xff]  ;;  %v654_v52 = vld [vmem:[%s2449_s7 + $0x8] sm:$0xff] }
  0x40   : > { %v577_v3 = vld [vmem:[%s554_s14] sm:$0xf]  ;;  %vm572_vm5 = vcmp.lt.s32.totalorder %v565_v9, %v571_v11  ;;  %s562_s14 = scalar_lea.vmem %s2487_s2, %s1560_s16  ;;  %s2467_s26 = smov 4   ;;  %v822_v21 = vld [vmem:[%s2453_s11 + $0x8] sm:$0xff] }
  0x41   : > { %v581_v5 = vpack.c.bf16 %v577_v3, %v577_v3  ;;  %vm573_vm6 = vmand %vm569_vm4, %vm572_vm5  ;;  %v578_v20 = vld [vmem:[%s562_s14] sm:$0xff]  ;;  %s1938_s28 = smov 127   ;;  %s2465_s16 = smov 126  }
  0x42   : > { %v2146_v13 = vsel %vm573_vm6, 1.0, %v1934_v0  ;;  %v729_v23 = vpack.c.bf16 %v578_v20, %v578_v20  ;;  %s576_s27 = sld [smem:[#allocation3 + %s1919_s22]]  ;;  %s1940_s15 = smov 125   ;;  %v653_v51 = vld [vmem:[%s2449_s7] sm:$0xff] }
  0x43   : > { %v594_v6 = vsel %vm592_vm1, %v581_v5, 0  ;;  %v655_v55 = vpack.c.bf16 %v654_v52, %v653_v51  ;;  %v821_v20 = vld [vmem:[%s2453_s11] sm:$0xff]  ;;  %s2488_s30 = smov 4   ;;  %s2469_s18 = smov 124  }
  0x44   : > { %1635 = vmatpush3.bf16.msra.mxu0 %v594_v6  ;;  %v2163_v24 = vsel %vm681_vm7, %v729_v23, 0  ;;  %s2491_s14 = sld [smem:[#allocation18_spill]]  ;;  %s544_s23 = sand.u32 1, %s1907_s19  }
  0x45   : > { %1648 = vmatprep.subr.bf16.mxu0 %v1934_v0 }
  0x47   : > { %1637 = vmatmul.mubr.msk.bf16.vlgmr.msra.gmra.mrb[0].mxu0 %vm588_vm2, %v580_v7 }
  0x48   : > { %1650 = vmatprep.mubr.msk.bf16.mxu0 %vm1935_vm0, %v1934_v0  ;;  %1649 = vmatpush3.bf16.msra.mxu0 %v2163_v24  ;;  %v2176_v30 = vstv %s576_s27 }
  0x49   : > { %1660 = vmatprep.subr.bf16.mxu0 %v1934_v0  ;;  %v794_v32 = vmul.f32 %v2176_v30, %v791_v29  ;;  %v793_v44 = vmul.f32 %v2176_v30, %v790_v43  ;;  %v1578_v43 = vld [vmem:[%s2451_s9 + $0x18] sm:$0xff] }
  0x4b   : > { %v798_v37 = vadd.f32 %v796_v35, %v794_v32  ;;  %v797_v48 = vadd.f32 %v795_v46, %v793_v44  ;;  %v1572_v32 = vld [vmem:[%s2447_s5 + $0x10] sm:$0xff]  ;;  %v1575_v46 = vld [vmem:[%s2448_s6 + $0x18] sm:$0xff] }
  0x4f   : > { %1651 = vmatmul.mubr.msk.bf16.vlgmr.msra.gmra.mrb[4].mxu0 %vm742_vm8, %v728_v25  ;;  %v823_v25 = vpack.c.bf16 %v822_v21, %v821_v20 }
  0x50   : > { %1664 = vmatprep.mubr.msk.bf16.mxu0 %vm1935_vm0, %v1934_v0 }
  0xba   : > { %v586_v12 = vpop.permute.xlu0 %585 }
 0x11a   : > { %v630_v14 = vpop.f32.mrb[0].mxu0 }
 0x11b   : > { %v631_v15 = vadd.f32 %v630_v14, %v586_v12  ;;  %v1638_v16 = vpop.f32.mrb[1].mxu0 }
 0x11c   : > { %v633_v17 = vpop.f32.mrb[2].mxu0 }
 0x11d   : > { %v2152_v18 = vmul.f32 %v2146_v13, %v631_v15  ;;  %v1639_v19 = vpop.f32.mrb[3].mxu0 }
 0x11f   : > { %640 = vrot.lane.b32.xlu0 %v2152_v18, %s2467_s26  ;;  %s2489_s26 = smov 126  }
 0x122   : > { %v783_v39 = vpop.f32.mrb[4].mxu0 }
 0x123   : > { %v1652_v40 = vpop.f32.mrb[5].mxu0 }
 0x124   : > { %v786_v47 = vpop.f32.mrb[6].mxu0 }
 0x125   : > { %v1653_v49 = vpop.f32.mrb[7].mxu0 }
 0x126   : > { %v1580_v49 = vld [vmem:[%s2452_s10 + $0x18] sm:$0xff] }
 0x191   : > { %v641_v26 = vpop.permute.xlu0 %640 }
 0x192   : > { %644 = vst.msk [vmem:[#allocation2] sm:$0xff] %vm643_vm9, %v641_v26 }
 0x199   : > { %v645_v27 = vld [vmem:[#allocation2] sm:$0xff] }
 0x19a   : > { %647 = vrot.lane.b32.xlu1 %v645_v27, %s1938_s28  ;;  %s1605_s28 = sshll.u32 %s1919_s22, 1 }
 0x19e   : > { %650 = vrot.lane.b32.xlu1 %v645_v27, %s2465_s16  ;;  %s2490_s16 = smov 124  }
 0x20c   : > { %v648_v28 = vpop.permute.xlu1 %647 }
 0x20d   : > { %v656_v31 = vpack.c.bf16 %v648_v28, %v645_v27 }
 0x20f   : > { %672 = vrot.lane.b32.xlu0 %v656_v31, %s1940_s15 }
 0x210   : > { %v651_v33 = vpop.permute.xlu1 %650 }
 0x211   : > { %v657_v36 = vpack.c.bf16 %v651_v33, %v651_v33  ;;  %v1573_v33 = vld [vmem:[%s2447_s5 + $0x18] sm:$0xff] }
 0x213   : > { %667 = vperm.xlu0 %1798, %v659_v34   ;;  %674 = vrot.lane.b32.xlu1 %v657_v36, %s1940_s15  ;;  %v976_v36 = vpack.c.bf16 %v1573_v33, %v1572_v32  ;;  %v1581_v33 = vld [vmem:[%s2453_s11 + $0x10] sm:$0xff] }
 0x217   : > { %808 = vperm.xlu0 %1798, %v798_v37   ;;  %739 = vperm.xlu1 %1799, %v731_v42  }
 0x21b   : > { %734 = vperm.xlu0 %1798, %v730_v38   ;;  %662 = vperm.xlu1 %1799, %v658_v45  }
 0x21f   : > { %829 = vperm.xlu0 %1798, %v825_v41   ;;  %803 = vperm.xlu1 %1799, %v797_v48   ;;  %v1570_v48 = vld [vmem:[%s2450_s8 + $0x18] sm:$0xff] }
 0x281   : > { %v673_v50 = vpop.permute.xlu0 %672 }
 0x282   : > { %1641 = vmatpush3.bf16.msra.mxu1 %v673_v50  ;;  %v1577_v50 = vld [vmem:[%s2451_s9 + $0x10] sm:$0xff] }
 0x283   : > { %1642 = vmatprep.subr.bf16.mxu1 %v1934_v0 }
 0x285   : > { %v675_v53 = vpop.permute.xlu1 %674 }
 0x286   : > { %v683_v54 = vsel %vm681_vm7, %v675_v53, 0  ;;  %v1037_v53 = vmul.f32 %v1577_v50, %v2176_v30  ;;  %v1597_v50 = vld [vmem:[%s2451_s9 + $0x28] sm:$0xff] }
 0x287   : > { %1643 = vmatpush3.bf16.msra.mxu1 %v683_v54 }
 0x288   : > { %1654 = vmatprep.subr.bf16.mxu1 %v1934_v0 }
 0x28a   : > { %1645 = vmatmul.mubr.msk.bf16.vlgmr.msra.gmra.mrb[0].mxu1 %vm677_vm10, %v655_v55  ;;  %v1569_v55 = vld [vmem:[%s2450_s8 + $0x10] sm:$0xff] }
 0x28b   : > { %1656 = vmatprep.mubr.msk.bf16.mxu1 %vm1935_vm0, %v1934_v0 }
 0x292   : > { %v668_v56 = vpop.permute.xlu0 %667 }
 0x296   : > { %v809_v57 = vpop.permute.xlu0 %808  ;;  %v740_v58 = vpop.permute.xlu1 %739 }
 0x297   : > { %v787_v3 = vadd.f32 %v786_v47, %v740_v58  ;;  %v1038_v47 = vmul.f32 %v1578_v43, %v2176_v30  ;;  %v1574_v58 = vld [vmem:[%s2448_s6 + $0x10] sm:$0xff] }
 0x299   : > { %v1043_v52 = vadd.f32 %v1580_v49, %v1038_v47 }
 0x29a   : > { %v735_v59 = vpop.permute.xlu0 %734  ;;  %v663_v60 = vpop.permute.xlu1 %662 }
 0x29b   : > { %v784_v62 = vadd.f32 %v783_v39, %v735_v59  ;;  %v1583_v59 = vld [vmem:[%s2454_s12 + $0x10] sm:$0xff] }
 0x29e   : > { %v804_v11 = vpop.permute.xlu1 %803  ;;  %v830_v26 = vpop.permute.xlu0 %829 }
 0x35d   : > { %v719_v61 = vpop.f32.mrb[0].mxu1 }
 0x35e   : > { %v720_v63 = vadd.f32 %v719_v61, %v663_v60  ;;  %v1646_v1 = vpop.f32.mrb[1].mxu1 }
 0x35f   : > { %v722_v2 = vpop.f32.mrb[2].mxu1 }
 0x360   : > { %v723_v4 = vadd.f32 %v722_v2, %v668_v56  ;;  %v799_v5 = vadd.f32 %v784_v62, %v720_v63  ;;  %v1647_v6 = vpop.f32.mrb[3].mxu1  ;;  %v1579_v56 = vld [vmem:[%s2452_s10 + $0x10] sm:$0xff]  ;;  %v1568_v63 = vld [vmem:[%s2449_s7 + $0x18] sm:$0xff] }
 0x361   : > { %v1567_v62 = vld [vmem:[%s2449_s7 + $0x10] sm:$0xff] }
 0x362   : > { %v800_v7 = vadd.f32 %v787_v3, %v723_v4  ;;  %v811_v12 = vadd.f32 %v804_v11, %v799_v5  ;;  %v903_v2 = vpack.c.bf16 %v1568_v63, %v1567_v62  ;;  %v1593_v63 = vld [vmem:[%s2448_s6 + $0x20] sm:$0xff] }
 0x364   : > { %v812_v8 = vadd.f32 %v809_v57, %v800_v7  ;;  %v1042_v57 = vadd.f32 %v1579_v56, %v1037_v53  ;;  %v1589_v53 = vld [vmem:[%s2450_s8 + $0x28] sm:$0xff] }
 0x366   : > { %v814_v9 = vsub.f32 0.0, %v812_v8 }
 0x368   : > { %v815_v10 = vmul.f32 1.442695, %v814_v9 }
 0x36a   : > { %1800 = vpow2.f32 %v815_v10 }
 0x36b   : > { %1802 = vtanh.f32 %v811_v12 }
 0x374   : > { %v1801_v14 = vpop.eup %1800 }
 0x375   : > { %v817_v15 = vadd.f32 1.0, %v1801_v14  ;;  %v1803_v16 = vpop.eup %1802 }
 0x377   : > { %1804 = vrcp.f32 %v817_v15 }
 0x381   : > { %v1805_v17 = vpop.eup %1804 }
 0x382   : > { %v820_v19 = vmul.f32 %v1805_v17, %v1803_v16 }
 0x384   : > { %v824_v22 = vpack.c.bf16 %v820_v19, %v820_v19 }
 0x386   : > { %v841_v23 = vsel %vm681_vm7, %v824_v22, 0 }
 0x387   : > { %1655 = vmatpush3.bf16.msra.mxu1 %v841_v23 }
 0x388   : > { %1668 = vmatprep.subr.bf16.mxu1 %v1934_v0 }
 0x38a   : > { %1657 = vmatmul.mubr.msk.bf16.vlgmr.msra.gmra.mrb[4].mxu1 %vm742_vm8, %v823_v25 }
 0x38b   : > { %1669 = vmatpush3.bf16.msra.mxu1 %v2163_v24  ;;  %1670 = vmatprep.mubr.msk.bf16.mxu1 %vm1935_vm0, %v1934_v0 }
 0x38c   : > { %1680 = vmatprep.subr.bf16.mxu1 %v1934_v0 }
 0x392   : > { %1671 = vmatmul.mubr.msk.bf16.vlgmr.msra.gmra.mrb[8].mxu1 %vm742_vm8, %v976_v36 }
 0x393   : > { %1684 = vmatprep.mubr.msk.bf16.mxu1 %vm1935_vm0, %v1934_v0 }
 0x45d   : > { %v877_v27 = vpop.f32.mrb[4].mxu1 }
 0x45e   : > { %v878_v28 = vadd.f32 %v877_v27, %v830_v26  ;;  %v1658_v29 = vpop.f32.mrb[5].mxu1 }
 0x45f   : > { %v2229_v31 = vpop.f32.mrb[6].mxu1 }
 0x460   : > { %v884_v34 = vadd.f32 %v878_v28, %v2152_v18  ;;  %v1659_v35 = vpop.f32.mrb[7].mxu1 }
 0x462   : > { %v2239_v37 = vmul.f32 %v2146_v13, %v884_v34  ;;  %v1582_v34 = vld [vmem:[%s2453_s11 + $0x18] sm:$0xff] }
 0x464   : > { %888 = vrot.lane.b32.xlu1 %v2239_v37, %s2488_s30 }
 0x465   : > { %v1027_v18 = vpop.f32.mrb[8].mxu1 }
 0x466   : > { %v1672_v40 = vpop.f32.mrb[9].mxu1 }
 0x467   : > { %v1030_v51 = vpop.f32.mrb[10].mxu1 }
 0x468   : > { %v1673_v54 = vpop.f32.mrb[11].mxu1 }
 0x469   : > { %v1599_v54 = vld [vmem:[%s2452_s10 + $0x28] sm:$0xff] }
 0x4d6   : > { %v889_v38 = vpop.permute.xlu1 %888 }
 0x4d7   : > { %891 = vst.msk [vmem:[#allocation2] sm:$0xff] %vm643_vm9, %v889_v38  ;;  %v1069_v38 = vpack.c.bf16 %v1582_v34, %v1581_v33 }
 0x4de   : > { %v892_v39 = vld [vmem:[#allocation2] sm:$0xff] }
 0x4df   : > { %897 = vrot.lane.b32.xlu1 %v892_v39, %s2469_s18  ;;  %894 = vrot.lane.b32.xlu0 %v892_v39, %s2489_s26  ;;  %s1942_s18 = smov 120  }
 0x551   : > { %v898_v41 = vpop.permute.xlu1 %897  ;;  %v895_v42 = vpop.permute.xlu0 %894 }
 0x552   : > { %v905_v44 = vpack.c.bf16 %v898_v41, %v898_v41  ;;  %v904_v45 = vpack.c.bf16 %v895_v42, %v892_v39  ;;  %v1591_v39 = vld [vmem:[%s2447_s5 + $0x20] sm:$0xff] }
 0x554   : > { %923 = vrot.lane.b32.xlu1 %v905_v44, %s2489_s26  ;;  %921 = vrot.lane.b32.xlu0 %v904_v45, %s2489_s26  ;;  %s1437_s26 = sadd.s32 %s1915_s21, %s1605_s28  ;;  %s1944_s21 = smov [#allocation6]  }
 0x555   : > { %s1606_s15 = sshll.u32 %s1437_s26, 6  ;;  %s1837_s22 = sshll.u32 %s1944_s21, 4  ;;  %s1838_s22 = int_to_ptr.vmem [resolvable:$false] %s1837_s22 }
 0x558   : > { %987 = vperm.xlu1 %1799, %v1575_v46   ;;  %916 = vperm.xlu0 %1798, %v1570_v48  }
 0x55c   : > { %911 = vperm.xlu1 %1799, %v1569_v55   ;;  %1053 = vperm.xlu0 %1798, %v1043_v52   ;;  %v1596_v55 = vld [vmem:[%s2451_s9 + $0x20] sm:$0xff] }
 0x560   : > { %1048 = vperm.xlu1 %1799, %v1042_v57   ;;  %982 = vperm.xlu0 %1798, %v1574_v58   ;;  %v1277_v58 = vmul.f32 %v1596_v55, %v2176_v30 }
 0x564   : > { %1076 = vperm.xlu0 %1798, %v1583_v59  }
 0x5c6   : > { %v922_v60 = vpop.permute.xlu0 %921  ;;  %v924_v61 = vpop.permute.xlu1 %923 }
 0x5c7   : > { %1661 = vmatpush3.bf16.msra.mxu0 %v922_v60  ;;  %v930_v1 = vsel %vm681_vm7, %v924_v61, 0  ;;  %v1588_v60 = vld [vmem:[%s2450_s8 + $0x20] sm:$0xff] }
 0x5c8   : > { %1662 = vmatprep.subr.bf16.mxu0 %v1934_v0  ;;  %v1598_v61 = vld [vmem:[%s2452_s10 + $0x20] sm:$0xff] }
 0x5c9   : > { %v1282_v62 = vadd.f32 %v1598_v61, %v1277_v58 }
 0x5cb   : > { %1663 = vmatpush3.bf16.msra.mxu0 %v930_v1  ;;  %v826_v1 = vld [vmem:[%s2454_s12 + $0x8] sm:$0xff] }
 0x5cc   : > { %1674 = vmatprep.subr.bf16.mxu0 %v1934_v0 }
 0x5ce   : > { %1665 = vmatmul.mubr.msk.bf16.vlgmr.msra.gmra.mrb[8].mxu0 %vm677_vm10, %v903_v2  ;;  %v1367_v2 = vld [vmem:[%s2491_s14] sm:$0xf]  ;;  %s1943_s14 = smov 121  }
 0x5cf   : > { %1676 = vmatprep.mubr.msk.bf16.mxu0 %vm1935_vm0, %v1934_v0 }
 0x5d7   : > { %v917_v3 = vpop.permute.xlu0 %916  ;;  %v988_v5 = vpop.permute.xlu1 %987 }
 0x5d8   : > { %v1031_v14 = vadd.f32 %v1030_v51, %v988_v5 }
 0x5db   : > { %v1054_v4 = vpop.permute.xlu0 %1053  ;;  %v912_v7 = vpop.permute.xlu1 %911 }
 0x5df   : > { %v983_v6 = vpop.permute.xlu0 %982  ;;  %v1049_v23 = vpop.permute.xlu1 %1048 }
 0x5e0   : > { %v1028_v9 = vadd.f32 %v1027_v18, %v983_v6  ;;  %v1592_v18 = vld [vmem:[%s2447_s5 + $0x28] sm:$0xff] }
 0x5e1   : > { %v1216_v40 = vpack.c.bf16 %v1592_v18, %v1591_v39 }
 0x6a1   : > { %v966_v8 = vpop.f32.mrb[8].mxu0 }
 0x6a2   : > { %v967_v10 = vadd.f32 %v966_v8, %v912_v7  ;;  %v1666_v11 = vpop.f32.mrb[9].mxu0  ;;  %v1586_v8 = vld [vmem:[%s2449_s7 + $0x20] sm:$0xff] }
 0x6a3   : > { %v969_v12 = vpop.f32.mrb[10].mxu0 }
 0x6a4   : > { %v1044_v15 = vadd.f32 %v1028_v9, %v967_v10  ;;  %v970_v16 = vadd.f32 %v969_v12, %v917_v3  ;;  %v1667_v17 = vpop.f32.mrb[11].mxu0  ;;  %v1601_v3 = vld [vmem:[%s2454_s12 + $0x20] sm:$0xff]  ;;  %v1587_v9 = vld [vmem:[%s2449_s7 + $0x28] sm:$0xff] }
 0x6a5   : > { %v1150_v11 = vpack.c.bf16 %v1587_v9, %v1586_v8 }
 0x6a6   : > { %v1045_v19 = vadd.f32 %v1031_v14, %v970_v16  ;;  %v1056_v25 = vadd.f32 %v1049_v23, %v1044_v15 }
 0x6a8   : > { %v1057_v20 = vadd.f32 %v1054_v4, %v1045_v19 }
 0x6aa   : > { %v1059_v21 = vsub.f32 0.0, %v1057_v20 }
 0x6ac   : > { %v1060_v22 = vmul.f32 1.442695, %v1059_v21 }
 0x6ae   : > { %1806 = vpow2.f32 %v1060_v22 }
 0x6af   : > { %1808 = vtanh.f32 %v1056_v25 }
 0x6b8   : > { %v1807_v26 = vpop.eup %1806 }
 0x6b9   : > { %v1062_v27 = vadd.f32 1.0, %v1807_v26  ;;  %v1809_v28 = vpop.eup %1808 }
 0x6bb   : > { %1810 = vrcp.f32 %v1062_v27 }
 0x6c5   : > { %v1811_v29 = vpop.eup %1810 }
 0x6c6   : > { %v1065_v32 = vmul.f32 %v1811_v29, %v1809_v28 }
 0x6c8   : > { %v1070_v35 = vpack.c.bf16 %v1065_v32, %v1065_v32 }
 0x6ca   : > { %v1088_v36 = vsel %vm681_vm7, %v1070_v35, 0 }
 0x6cb   : > { %1675 = vmatpush3.bf16.msra.mxu0 %v1088_v36 }
 0x6cc   : > { %1688 = vmatprep.subr.bf16.mxu0 %v1934_v0 }
 0x6ce   : > { %1677 = vmatmul.mubr.msk.bf16.vlgmr.msra.gmra.mrb[12].mxu0 %vm742_vm8, %v1069_v38 }
 0x6cf   : > { %1689 = vmatpush3.bf16.msra.mxu0 %v2163_v24  ;;  %1690 = vmatprep.mubr.msk.bf16.mxu0 %vm1935_vm0, %v1934_v0  ;;  %v1077_v24 = vpop.permute.xlu0 %1076 }
 0x6d0   : > { %1700 = vmatprep.subr.bf16.mxu0 %v1934_v0 }
 0x6d6   : > { %1691 = vmatmul.mubr.msk.bf16.vlgmr.msra.gmra.mrb[16].mxu0 %vm742_vm8, %v1216_v40 }
 0x6d7   : > { %1702 = vmatprep.mubr.msk.bf16.mxu0 %vm1935_vm0, %v1934_v0 }
 0x7a1   : > { %v1124_v41 = vpop.f32.mrb[12].mxu0 }
 0x7a2   : > { %v1125_v42 = vadd.f32 %v1124_v41, %v1077_v24  ;;  %v1678_v43 = vpop.f32.mrb[13].mxu0 }
 0x7a3   : > { %v2314_v44 = vpop.f32.mrb[14].mxu0 }
 0x7a4   : > { %v1131_v45 = vadd.f32 %v1125_v42, %v2239_v37  ;;  %v1679_v46 = vpop.f32.mrb[15].mxu0  ;;  %v1278_v37 = vmul.f32 %v1597_v50, %v2176_v30  ;;  %v1584_v30 = vld [vmem:[%s2454_s12 + $0x18] sm:$0xff] }
 0x7a6   : > { %v1132_v47 = vmul.f32 %v2146_v13, %v1131_v45  ;;  %v1594_v13 = vld [vmem:[%s2448_s6 + $0x28] sm:$0xff]  ;;  %v1283_v57 = vadd.f32 %v1599_v54, %v1278_v37 }
 0x7a8   : > { %1135 = vrot.lane.b32.xlu1 %v1132_v47, %s2488_s30  ;;  %s1556_s30 = sshll.u32 %s544_s23, 2 }
 0x7a9   : > { %v1267_v49 = vpop.f32.mrb[16].mxu0  ;;  %s546_s0 = scalar_lea.vmem [#allocation6], %s1556_s30  ;;  %s1839_s30 = scalar_lea.vmem %s1838_s22, 128 }
 0x7aa   : > { %v1692_v51 = vpop.f32.mrb[17].mxu0  ;;  %s1441_s27 = sshll.u32 %s546_s0, 4  ;;  %s2391_s27 = int_to_ptr.vmem [resolvable:$true] %s1441_s27 }
 0x7ab   : > { %v1270_v56 = vpop.f32.mrb[18].mxu0  ;;  %s1833_s2 = scalar_lea.vmem %s2391_s27, 64  ;;  %p1840_p0 = scmp.lt.s32.totalorder %s2391_s27, %s1838_s22 }
 0x7ac   : > { %v1693_v59 = vpop.f32.mrb[19].mxu0  ;;  %p1834_p8 = scmp.ne.s32.totalorder %s2391_s27, %s1833_s2  ;;  %p1841_p1 = scmp.lt.s32.totalorder %s1839_s30, %s1833_s2 }
 0x7ae   : > { %p1835_p10 = pnand %p1834_p8, %p2077_p3  ;;  %p1842_p2 = por %p1841_p1, %p1840_p0 }
 0x7b0   : > { %p1836_p12 = pneg %p1835_p10 }
 0x7b2   : > { %p1843_p4 = pnand %p1842_p2, %p1836_p12 }
 0x81a   : > { %v1136_v48 = vpop.permute.xlu1 %1135 }
 0x81b   : > { %1138 = vst.msk [vmem:[#allocation2] sm:$0xff] %vm643_vm9, %v1136_v48 }
 0x822   : > { %v1139_v52 = vld [vmem:[#allocation2] sm:$0xff] }
 0x823   : > { %1144 = vrot.lane.b32.xlu1 %v1139_v52, %s1942_s18  ;;  %1141 = vrot.lane.b32.xlu0 %v1139_v52, %s2490_s16  ;;  %s2492_s16 = sld [smem:[#allocation17_spill]] }
 0x827   : > { %1227 = vperm.xlu1 %1799, %v1594_v13   ;;  %1163 = vperm.xlu0 %1798, %v1589_v53  }
 0x829   : > { %v1364_v53 = vld [vmem:[%s2492_s16] sm:$0xf]  ;;  %s2493_s16 = sld [smem:[#allocation19_spill]] }
 0x82b   : > { %1158 = vperm.xlu1 %1799, %v1588_v60   ;;  %1293 = vperm.xlu0 %1798, %v1283_v57  }
 0x82f   : > { %1288 = vperm.xlu1 %1799, %v1282_v62   ;;  %1222 = vperm.xlu0 %1798, %v1593_v63   ;;  %s2389_s1 = scalar_lea.hbm %s2493_s16, %s1606_s15 }
 0x833   : > { %1081 = vperm.xlu1 %1799, %v1584_v30   ;;  %834 = vperm.xlu0 %1798, %v826_v1  }
 0x837   : > { %1370 = vperm.xlu1 %1799, %v1367_v2   ;;  %1314 = vperm.xlu0 %1798, %v1601_v3  }
 0x895   : > { %v1145_v4 = vpop.permute.xlu1 %1144  ;;  %v1142_v5 = vpop.permute.xlu0 %1141 }
 0x896   : > { %v1151_v6 = vpack.c.bf16 %v1142_v5, %v1139_v52  ;;  %v1152_v7 = vpack.c.bf16 %v1145_v4, %v1145_v4 }
 0x898   : > { %1681 = vmatpush3.bf16.msra.mxu1 %v1151_v6  ;;  %v1170_v10 = vsel %vm681_vm7, %v1152_v7, 0 }
 0x899   : > { %1682 = vmatprep.subr.bf16.mxu1 %v1934_v0 }
 0x89c   : > { %1683 = vmatpush3.bf16.msra.mxu1 %v1170_v10 }
 0x89d   : > { %1694 = vmatprep.subr.bf16.mxu1 %v1934_v0 }
 0x89f   : > { %1685 = vmatmul.mubr.msk.bf16.vlgmr.msra.gmra.mrb[12].mxu1 %vm677_vm10, %v1150_v11 }
 0x8a0   : > { %1696 = vmatprep.mubr.msk.bf16.mxu1 %vm1935_vm0, %v1934_v0 }
 0x8a6   : > { %v1228_v12 = vpop.permute.xlu1 %1227  ;;  %v1164_v14 = vpop.permute.xlu0 %1163 }
 0x8a7   : > { %v1271_v33 = vadd.f32 %v1270_v56, %v1228_v12  ;;  %v1365_v56 = vpack.c.bf16 %v1364_v53, %v1364_v53 }
 0x8aa   : > { %v1159_v15 = vpop.permute.xlu1 %1158  ;;  %v1294_v16 = vpop.permute.xlu0 %1293 }
 0x8ae   : > { %v1289_v17 = vpop.permute.xlu1 %1288  ;;  %v1223_v19 = vpop.permute.xlu0 %1222 }
 0x8af   : > { %v1268_v27 = vadd.f32 %v1267_v49, %v1223_v19 }
 0x8b2   : > { %v1082_v20 = vpop.permute.xlu1 %1081  ;;  %v835_v21 = vpop.permute.xlu0 %834 }
 0x8b3   : > { %v1128_v22 = vadd.f32 %v2314_v44, %v1082_v20  ;;  %v881_v23 = vadd.f32 %v2229_v31, %v835_v21  ;;  %v1600_v44 = vld [vmem:[%s2453_s11 + $0x20] sm:$0xff] }
 0x8b4   : > { %v1308_v47 = vpack.c.bf16 %v1600_v44, %v1600_v44 }
 0x8b5   : > { %v1133_v25 = vadd.f32 %v1128_v22, %v881_v23 }
 0x8b6   : > { %v1315_v48 = vpop.permute.xlu0 %1314  ;;  %v1371_v57 = vpop.permute.xlu1 %1370 }
 0x972   : > { %v1206_v26 = vpop.f32.mrb[12].mxu1 }
 0x973   : > { %v1207_v28 = vadd.f32 %v1206_v26, %v1159_v15  ;;  %v1686_v29 = vpop.f32.mrb[13].mxu1 }
 0x974   : > { %v1209_v32 = vpop.f32.mrb[14].mxu1 }
 0x975   : > { %v1284_v0 = vadd.f32 %v1268_v27, %v1207_v28  ;;  %v1210_v34 = vadd.f32 %v1209_v32, %v1164_v14  ;;  %v1687_v35 = vpop.f32.mrb[15].mxu1 }
 0x977   : > { %v1285_v36 = vadd.f32 %v1271_v33, %v1210_v34  ;;  %v1296_v40 = vadd.f32 %v1289_v17, %v1284_v0 }
 0x979   : > { %v1297_v38 = vadd.f32 %v1294_v16, %v1285_v36 }
 0x97b   : > { %v1299_v39 = vsub.f32 0.0, %v1297_v38 }
 0x97d   : > { %v1300_v18 = vmul.f32 1.442695, %v1299_v39 }
 0x97f   : > { %1812 = vpow2.f32 %v1300_v18 }
 0x980   : > { %1814 = vtanh.f32 %v1296_v40 }
 0x989   : > { %v1813_v24 = vpop.eup %1812 }
 0x98a   : > { %v1302_v41 = vadd.f32 1.0, %v1813_v24  ;;  %v1815_v31 = vpop.eup %1814 }
 0x98c   : > { %1816 = vrcp.f32 %v1302_v41 }
 0x996   : > { %v1817_v42 = vpop.eup %1816 }
 0x997   : > { %v1305_v43 = vmul.f32 %v1817_v42, %v1815_v31 }
 0x999   : > { %v1309_v45 = vpack.c.bf16 %v1305_v43, %v1305_v43 }
 0x99b   : > { %v1321_v46 = vsel %vm681_vm7, %v1309_v45, 0 }
 0x99c   : > { %1695 = vmatpush3.bf16.msra.mxu1 %v1321_v46 }
 0x99f   : > { %1697 = vmatmul.mubr.msk.bf16.vlgmr.msra.gmra.mrb[16].mxu1 %vm742_vm8, %v1308_v47 }
 0xa72   : > { %v1357_v49 = vpop.f32.mrb[16].mxu1 }
 0xa73   : > { %v1358_v50 = vadd.f32 %v1357_v49, %v1315_v48  ;;  %v1698_v51 = vpop.f32.mrb[17].mxu1 }
 0xa74   : > { %v1360_v52 = vpop.f32.mrb[18].mxu1 }
 0xa75   : > { %v1363_v13 = vadd.f32 %v1358_v50, %v1133_v25  ;;  %v1699_v37 = vpop.f32.mrb[19].mxu1 }
 0xa77   : > { %v1366_v54 = vpack.c.bf16 %v1363_v13, %v1363_v13 }
 0xa79   : > { %v1377_v55 = vsel %vm681_vm7, %v1366_v54, 0 }
 0xa7a   : > { %1701 = vmatpush3.bf16.msra.mxu0 %v1377_v55 }
 0xa7d   : > { %1703 = vmatmul.mubr.msk.bf16.vlgmr.msra.gmra.mrb[20].mxu0 %vm742_vm8, %v1365_v56 }
 0xb50   : > { %v1413_v58 = vpop.f32.mrb[20].mxu0 }
 0xb51   : > { %v1414_v59 = vadd.f32 %v1413_v58, %v1371_v57  ;;  %v1704_v60 = vpop.f32.mrb[21].mxu0 }
 0xb52   : > { %v1416_v61 = vpop.f32.mrb[22].mxu0 }
 0xb53   : > { %1420 = vrot.lane.b32.xlu0 %v1414_v59, %s1943_s14  ;;  %v1705_v62 = vpop.f32.mrb[23].mxu0  ;;  %s1426_s14 = scalar_lea.sflag [#allocation4], %s544_s23 }
 0xbc5   : > { %v1421_v63 = vpop.permute.xlu0 %1420 }
 0xbc6   : > { %1424 = vst.msk [vmem:[%s546_s0] sm:$0xf] %vm1423_vm11, %v1421_v63 }
 0xbc7   : > { %1846 = shalt.err (!%p1843_p4)
}
 0xbc8   : > { %s1847_s23 = scalar_lea.hbm %s2389_s1, 64  ;;  %s1851_s15 = scalar_lea.hbm %s2493_s16, 256 }
 0xbc9   : > { %p1848_p5 = scmp.ne.s32.totalorder %s2389_s1, %s1847_s23  ;;  %p1852_p9 = scmp.lt.u32.totalorder %s2389_s1, %s2493_s16 }
 0xbca   : > { %p1853_p11 = scmp.lt.u32.totalorder %s1851_s15, %s1847_s23  ;;  %p1855_p8 = scmp.lt.u32.totalorder %s1847_s23, %s2389_s1 }
 0xbcb   : > { %p1849_p6 = pnand %p1848_p5, %p2077_p3 }
 0xbcc   : > { %p1854_p13 = por %p1853_p11, %p1852_p9 }
 0xbcd   : > { %p1850_p7 = pneg %p1849_p6 }
 0xbce   : > { %p1856_p10 = por %p1855_p8, %p1854_p13 }
 0xbd0   : > { %p1857_p12 = pnand %p1856_p10, %p1850_p7 }
 0xbd2   : > { %1860 = shalt.err (!%p1857_p12)
}
 0xbd3   : > { %1710 = dma.vmem_to_hbm [thread:$0]  (%p2077_p3), %s2391_s27, 64, %s2389_s1, %s1426_s14  }
 0xbd4 PF: > { %s2494_s2 = sld [smem:[#allocation11_spill]]  ;;  %s2495_s18 = sld [smem:[#allocation9_spill]] }
 0xbd5   : > { %s2496_s21 = sld [smem:[#allocation13_spill]] }
 0xbda   : > { %p1722_p0 = scmp.ge.s32.totalorder %s2494_s2, 2  ;;  %s1453_s22 = sand.u32 1, %s2495_s18  }
 0xbdb   : > { %p2497_p1 = scmp.ne.s32.totalorder %s2496_s21, 0  ;;  %s1454_s30 = scalar_lea.sflag [#allocation4], %s1453_s22 }
 0xbdd   : > { %p1717_p2 = pnand %p1722_p0, %p2497_p1 }
 0xbdf   : > { %1898 = dma.done.wait (!%p1717_p2), %s1454_s30, 64  }
 0xbe0   : > { %1900 = vsyncadd (!%p1717_p2), %s1454_s30, 4294967232  ;;  %s29_s28 = sadd.s32 1, %s2494_s2   ;;  %s2498_s21 = sld [smem:[#allocation10_spill]] }
 0xbe1   : > { %p26_p4 = scmp.ge.s32.totalorder %s29_s28, 6   ;;  %s2499_s23 = sld [smem:[#allocation12_spill]] }
 0xbe2   : > { %s2500_s18 = smov %s1907_s19  ;;  %s2501_s19 = smov %s1911_s20 }
 0xbe3   : > { %s2502_s20 = smov %s2107_s25  ;;  %s2503_s22 = smov %s1927_s24 }
 0xbe4   : > { %s2504_s24 = smov %s2511_s29  ;;  %s2505_s25 = smov %s29_s28 }
 0xbe5   :  { %28 = sbr.rel (!%p26_p4) target bundleno = 13 (0xd), region = 139 }
 0xbec   :  { %1459 = vsyncpa [#allocation4], 1 }
 0xbed   :  { %1461 = vsyncpa [#allocation4 + $0x1], 1 }
 0xbee   :  { %1462 = vsyncpa [#allocation5], 1 }
 0xbef   :  { %1464 = vsyncpa [#allocation5 + $0x1], 1 }

</bundles_post_ra>
